<compile_context>
chip_gen: v7x
topology: tpu7x:2x2x1
jax: 0.10.0
libtpu: 0.0.40
codegen_flags: <defaults>
</compile_context>

<pallas_src>
import functools

import numpy as np
import jax
import jax.numpy as jnp
from jax.experimental import pallas as pl
from jax.experimental.pallas import tpu as pltpu


# --------------------------------------------------------------------------- #
# Kernel: one grid step = one batch element's (T, C) slab.
# --------------------------------------------------------------------------- #
def prenorm_block_kernel(x_ref,
                         ln1_g_ref, ln1_b_ref,
                         wqkv_ref, fc_w_ref, fc_b_ref,
                         ln2_g_ref, ln2_b_ref,
                         w1_ref, b1_ref, w2_ref, b2_ref,
                         o_ref,
                         *, n_head, matmul_dtype):
    x = x_ref[...]                                   # (T, C) f32
    T, C = x.shape
    H = n_head
    D = C // H
    scale = 1.0 / np.sqrt(D)

    def mm(a, b):
        # Cast operands at the MXU boundary (bf16 on v6e/v7x peak path),
        # accumulate in f32.
        return jnp.dot(a.astype(matmul_dtype), b.astype(matmul_dtype),
                       preferred_element_type=jnp.float32)

    def layer_norm(h, g_ref, b_ref):
        # Standard nn.LayerNorm semantics: rsqrt(var + eps).  All f32.
        mu = jnp.mean(h, axis=-1, keepdims=True)
        var = jnp.mean(jnp.square(h - mu), axis=-1, keepdims=True)
        return (h - mu) * jax.lax.rsqrt(var + 1e-5) * g_ref[...] + b_ref[...]

    # ---------- PreNorm #1 : LayerNorm -> causal MHA -> residual -------------
    h = layer_norm(x, ln1_g_ref, ln1_b_ref)

    # One full-width QKV matmul: (T, C) x (C, 3C).  No per-head matmuls,
    # no broadcast of h.
    qkv = mm(h, wqkv_ref[...])                       # (T, 3C) f32

    # Head split: layout plumbing only (static (T, D) lane slices stacked on a
    # new leading/major axis).  All real FLOPs stay in full-width matmuls.
    def split_heads(base):
        return jnp.stack(
            [qkv[:, base + hh * D: base + (hh + 1) * D] for hh in range(H)],
            axis=0)                                  # (H, T, D)

    q = split_heads(0)
    k = split_heads(C)
    v = split_heads(2 * C)

    # Head-batched scores.  At larger T replace this (H, T, T) materialization
    # with a flash-style online softmax over 128/256-wide KV tiles.
    s = jnp.einsum('hqd,hkd->hqk',
                   q.astype(matmul_dtype), k.astype(matmul_dtype),
                   preferred_element_type=jnp.float32) * scale   # (H, T, T)

    # Causal additive bias generated in-kernel (no O(R^2) bias DMA); -1e30
    # instead of -inf avoids inf-inf NaNs in the max-subtraction.
    row = jax.lax.broadcasted_iota(jnp.int32, (T, T), 0)
    col = jax.lax.broadcasted_iota(jnp.int32, (T, T), 1)
    s = s + jnp.where(row >= col, 0.0, -1e30)[None, :, :]

    m = jnp.max(s, axis=-1, keepdims=True)
    e = jnp.exp(s - m)
    denom = jnp.sum(e, axis=-1, keepdims=True)
    inv = pl.reciprocal(denom, approx=True)          # EUP slot, not VPU divide
    inv = inv * (2.0 - denom * inv)                  # one Newton step -> f32 acc.
    p = e * inv

    a = jnp.einsum('hqk,hkd->hqd',
                   p.astype(matmul_dtype), v.astype(matmul_dtype),
                   preferred_element_type=jnp.float32)           # (H, T, D)

    # Re-pack heads head-major on lanes (matches fc_w's input ordering) and do
    # ONE output projection with full K = H*D = C systolic depth.
    a_flat = jnp.concatenate([a[hh] for hh in range(H)], axis=-1)  # (T, C)
    attn = mm(a_flat, fc_w_ref[...]) + fc_b_ref[...]
    x1 = x + attn                                    # residual (dropout p = 0)

    # ---------- PreNorm #2 : LayerNorm -> GeLU2 MLP -> residual --------------
    h2 = layer_norm(x1, ln2_g_ref, ln2_b_ref)
    h2 = mm(h2, w1_ref[...]) + b1_ref[...]
    h2 = jax.nn.sigmoid(1.702 * h2) * h2             # GeLU2
    h2 = mm(h2, w2_ref[...]) + b2_ref[...]

    # Lane-dense store (C is a multiple of 128 -> unmasked vst).
    o_ref[...] = (x1 + h2).astype(o_ref.dtype)       # residual (dropout p = 0)


# --------------------------------------------------------------------------- #
# One-time parameter packing (hoisted out of the forward pass).
# --------------------------------------------------------------------------- #
def pack_params(params):
    """Done once at model init; the forward pass never repacks weights."""
    return {
        "ln1_g": params["ln1_g"], "ln1_b": params["ln1_b"],
        "ln2_g": params["ln2_g"], "ln2_b": params["ln2_b"],
        # Fused QKV weight: columns = [q | k | v], each head-major (h*D + d),
        # which is exactly nn.Linear's natural output ordering.
        "wqkv": jnp.concatenate([params["wq"], params["wk"], params["wv"]],
                                axis=1),                        # (C, 3C)
        "fc_w": params["fc_w"], "fc_b": params["fc_b"],
        "w1": params["w1"], "b1": params["b1"],
        "w2": params["w2"], "b2": params["b2"],
    }


# --------------------------------------------------------------------------- #
# Wrapper
# --------------------------------------------------------------------------- #
def prenorm_transformer_block(x, packed, *, n_head,
                              matmul_dtype=jnp.bfloat16):
    """x: (B, T, C) f32.  packed: output of pack_params()."""
    B, T, C = x.shape

    kernel = functools.partial(prenorm_block_kernel,
                               n_head=n_head, matmul_dtype=matmul_dtype)

    def rep(arr):
        # Full-array block, identical on every grid step (no per-step re-DMA
        # of a different tile; all weights fit comfortably in VMEM).
        shape = arr.shape
        return pl.BlockSpec(shape, lambda b, _n=len(shape): (0,) * _n)

    in_specs = [
        pl.BlockSpec((None, T, C), lambda b: (b, 0, 0)),        # x (per batch)
        rep(packed["ln1_g"]), rep(packed["ln1_b"]),
        rep(packed["wqkv"]), rep(packed["fc_w"]), rep(packed["fc_b"]),
        rep(packed["ln2_g"]), rep(packed["ln2_b"]),
        rep(packed["w1"]), rep(packed["b1"]),
        rep(packed["w2"]), rep(packed["b2"]),
    ]

    # Batch grid axis marked "parallel": lets v7x shard steps across its two
    # TensorCores (no effect on single-TC v5e/v6e).  When B*T grows, also add
    # query-row tiles (reduction axis last, "arbitrary") and raise
    # vmem_limit_bytes here.
    return pl.pallas_call(
        kernel,
        out_shape=jax.ShapeDtypeStruct((B, T, C), jnp.float32),
        grid=(B,),
        in_specs=in_specs,
        out_specs=pl.BlockSpec((None, T, C), lambda b: (b, 0, 0)),
        compiler_params=pltpu.CompilerParams(
            dimension_semantics=("parallel",)),
    )(x, packed["ln1_g"], packed["ln1_b"],
      packed["wqkv"], packed["fc_w"], packed["fc_b"],
      packed["ln2_g"], packed["ln2_b"],
      packed["w1"], packed["b1"], packed["w2"], packed["b2"])


# --------------------------------------------------------------------------- #
# Pure-JAX reference (faithful translation of the PyTorch forward)
# --------------------------------------------------------------------------- #
def reference_forward(x, params, *, n_head):
    B, T, C = x.shape
    D = C // n_head
    PREC = jax.lax.Precision.HIGHEST

    def layer_norm(h, g, b):
        mu = jnp.mean(h, axis=-1, keepdims=True)
        var = jnp.mean((h - mu) ** 2, axis=-1, keepdims=True)
        return (h - mu) * jax.lax.rsqrt(var + 1e-5) * g[0] + b[0]

    h = layer_norm(x, params["ln1_g"], params["ln1_b"])
    q = jnp.dot(h, params["wq"], precision=PREC)
    k = jnp.dot(h, params["wk"], precision=PREC)
    v = jnp.dot(h, params["wv"], precision=PREC)
    qh = q.reshape(B, T, n_head, D).transpose(0, 2, 1, 3)
    kh = k.reshape(B, T, n_head, D).transpose(0, 2, 1, 3)
    vh = v.reshape(B, T, n_head, D).transpose(0, 2, 1, 3)
    s = jnp.einsum("bhtd,bhsd->bhts", qh, kh, precision=PREC) / np.sqrt(D)
    mask = jnp.tril(jnp.ones((T, T), dtype=bool))
    s = jnp.where(mask, s, -jnp.inf)
    p = jax.nn.softmax(s, axis=-1)
    a = jnp.einsum("bhts,bhsd->bhtd", p, vh, precision=PREC)
    a = a.transpose(0, 2, 1, 3).reshape(B, T, C)
    a = jnp.dot(a, params["fc_w"], precision=PREC) + params["fc_b"][0]
    x1 = x + a
    h2 = layer_norm(x1, params["ln2_g"], params["ln2_b"])
    h2 = jnp.dot(h2, params["w1"], precision=PREC) + params["b1"][0]
    h2 = jax.nn.sigmoid(1.702 * h2) * h2
    h2 = jnp.dot(h2, params["w2"], precision=PREC) + params["b2"][0]
    return x1 + h2


# --------------------------------------------------------------------------- #
# Main
# --------------------------------------------------------------------------- #
if __name__ == "__main__":
    # Small shapes consistent with the module; C=128 keeps all matmul tiles
    # and stores lane-dense.  (At R=B*T=16, M is far below a full MXU tile,
    # so this shape is latency-bound by construction -- fold more sequences
    # per call in a real workload before anything else.)
    B, T, C = 2, 8, 128
    n_head, n_layer = 4, 2

    key = jax.random.PRNGKey(0)
    ks = jax.random.split(key, 14)

    params = {
        # LayerNorm params (random to exercise the affine path).
        "ln1_g": 1.0 + 0.1 * jax.random.normal(ks[0], (1, C), jnp.float32),
        "ln1_b": 0.05 * jax.random.normal(ks[1], (1, C), jnp.float32),
        "ln2_g": 1.0 + 0.1 * jax.random.normal(ks[2], (1, C), jnp.float32),
        "ln2_b": 0.05 * jax.random.normal(ks[3], (1, C), jnp.float32),
        # Attention projections, [in, out] layout.
        "wq": jax.random.normal(ks[4], (C, C), jnp.float32) / np.sqrt(C),
        "wk": jax.random.normal(ks[5], (C, C), jnp.float32) / np.sqrt(C),
        "wv": jax.random.normal(ks[6], (C, C), jnp.float32) / np.sqrt(C),
        "fc_w": jax.random.normal(ks[7], (C, C), jnp.float32) / np.sqrt(C * n_layer),
        "fc_b": 0.02 * jax.random.normal(ks[8], (1, C), jnp.float32),
        # fc_block: Linear(C -> 4C), GeLU2, Linear(4C -> C).
        "w1": jax.random.normal(ks[9], (C, 4 * C), jnp.float32) / np.sqrt(C),
        "b1": 0.02 * jax.random.normal(ks[10], (1, 4 * C), jnp.float32),
        "w2": jax.random.normal(ks[11], (4 * C, C), jnp.float32) / np.sqrt(4 * C),
        "b2": 0.02 * jax.random.normal(ks[12], (1, C), jnp.float32),
    }

    x = jax.random.normal(ks[13], (B, T, C), jnp.float32)

    # One-time packing at init (hoisted out of the forward pass).
    packed = pack_params(params)
    ref = reference_forward(x, params, n_head=n_head)

    # f32-operand MXU path (v5e default / exact-numerics path): tight check.
    # Tolerance deliberately loosened slightly vs. Precision.HIGHEST reference.
    out_f32 = prenorm_transformer_block(x, packed, n_head=n_head,
                                        matmul_dtype=jnp.float32)
    out_f32 = jax.block_until_ready(out_f32)
    np.testing.assert_allclose(np.asarray(out_f32), np.asarray(ref),
                               rtol=1e-4, atol=1e-4)

    # bf16-operand MXU path (v6e/v7x peak): smoke-level accuracy check with a
    # deliberately loose tolerance (bf16 inputs, f32 accumulation).
    out_bf16 = prenorm_transformer_block(x, packed, n_head=n_head,
                                         matmul_dtype=jnp.bfloat16)
    out_bf16 = jax.block_until_ready(out_bf16)
    np.testing.assert_allclose(np.asarray(out_bf16), np.asarray(ref),
                               rtol=1e-1, atol=1e-1)

    print("KERNEL_OK")
</pallas_src>

<mosaic_0001>
module attributes {stable_mosaic.version = 11 : i64} {
  func.func @prenorm_block_kernel(%arg0: i32, %arg1: memref<1x8x128xf32, #tpu.memory_space<vmem>>, %arg2: memref<1x128xf32, #tpu.memory_space<vmem>>, %arg3: memref<1x128xf32, #tpu.memory_space<vmem>>, %arg4: memref<128x384xf32, #tpu.memory_space<vmem>>, %arg5: memref<128x128xf32, #tpu.memory_space<vmem>>, %arg6: memref<1x128xf32, #tpu.memory_space<vmem>>, %arg7: memref<1x128xf32, #tpu.memory_space<vmem>>, %arg8: memref<1x128xf32, #tpu.memory_space<vmem>>, %arg9: memref<128x512xf32, #tpu.memory_space<vmem>>, %arg10: memref<1x512xf32, #tpu.memory_space<vmem>>, %arg11: memref<512x128xf32, #tpu.memory_space<vmem>>, %arg12: memref<1x128xf32, #tpu.memory_space<vmem>>, %arg13: memref<1x8x128xf32, #tpu.memory_space<vmem>>) attributes {dimension_semantics = [#tpu.dimension_semantics<parallel>], iteration_bounds = array<i64: 2>, scalar_prefetch = 0 : i64, scratch_operands = 0 : i64, tpu.core_type = #tpu.core_type<tc>, window_params = [{transform_indices = @transform_0, window_bounds = array<i64: 1, 8, 128>}, {pipeline_mode = #tpu.pipeline_mode<synchronous>, transform_indices = @transform_1, window_bounds = array<i64: 1, 128>}, {pipeline_mode = #tpu.pipeline_mode<synchronous>, transform_indices = @transform_2, window_bounds = array<i64: 1, 128>}, {pipeline_mode = #tpu.pipeline_mode<synchronous>, transform_indices = @transform_3, window_bounds = array<i64: 128, 384>}, {pipeline_mode = #tpu.pipeline_mode<synchronous>, transform_indices = @transform_4, window_bounds = array<i64: 128, 128>}, {pipeline_mode = #tpu.pipeline_mode<synchronous>, transform_indices = @transform_5, window_bounds = array<i64: 1, 128>}, {pipeline_mode = #tpu.pipeline_mode<synchronous>, transform_indices = @transform_6, window_bounds = array<i64: 1, 128>}, {pipeline_mode = #tpu.pipeline_mode<synchronous>, transform_indices = @transform_7, window_bounds = array<i64: 1, 128>}, {pipeline_mode = #tpu.pipeline_mode<synchronous>, transform_indices = @transform_8, window_bounds = array<i64: 128, 512>}, {pipeline_mode = #tpu.pipeline_mode<synchronous>, transform_indices = @transform_9, window_bounds = array<i64: 1, 512>}, {pipeline_mode = #tpu.pipeline_mode<synchronous>, transform_indices = @transform_10, window_bounds = array<i64: 512, 128>}, {pipeline_mode = #tpu.pipeline_mode<synchronous>, transform_indices = @transform_11, window_bounds = array<i64: 1, 128>}, {transform_indices = @transform_12, window_bounds = array<i64: 1, 8, 128>}]} {
    %c0 = arith.constant 0 : index
    %c0_0 = arith.constant 0 : index
    %c0_1 = arith.constant 0 : index
    %0 = vector.load %arg1[%c0, %c0_0, %c0_1] : memref<1x8x128xf32, #tpu.memory_space<vmem>>, vector<1x8x128xf32>
    %1 = vector.shape_cast %0 : vector<1x8x128xf32> to vector<8x128xf32>
    %cst = arith.constant dense<0.000000e+00> : vector<8xf32>
    %2 = vector.multi_reduction <add>, %1, %cst [1] : vector<8x128xf32> to vector<8xf32>
    %3 = vector.shape_cast %2 : vector<8xf32> to vector<8x1xf32>
    %cst_2 = arith.constant 1.280000e+02 : f32
    %4 = vector.broadcast %cst_2 : f32 to vector<8x1xf32>
    %5 = arith.divf %3, %4 : vector<8x1xf32>
    %6 = vector.broadcast %5 : vector<8x1xf32> to vector<8x128xf32>
    %7 = arith.subf %1, %6 : vector<8x128xf32>
    %8 = arith.mulf %7, %7 : vector<8x128xf32>
    %cst_3 = arith.constant dense<0.000000e+00> : vector<8xf32>
    %9 = vector.multi_reduction <add>, %8, %cst_3 [1] : vector<8x128xf32> to vector<8xf32>
    %10 = vector.shape_cast %9 : vector<8xf32> to vector<8x1xf32>
    %cst_4 = arith.constant 1.280000e+02 : f32
    %11 = vector.broadcast %cst_4 : f32 to vector<8x1xf32>
    %12 = arith.divf %10, %11 : vector<8x1xf32>
    %13 = vector.broadcast %5 : vector<8x1xf32> to vector<8x128xf32>
    %14 = arith.subf %1, %13 : vector<8x128xf32>
    %cst_5 = arith.constant 9.99999974E-6 : f32
    %15 = vector.broadcast %cst_5 : f32 to vector<8x1xf32>
    %16 = arith.addf %12, %15 : vector<8x1xf32>
    %17 = math.rsqrt %16 : vector<8x1xf32>
    %18 = vector.broadcast %17 : vector<8x1xf32> to vector<8x128xf32>
    %19 = arith.mulf %14, %18 : vector<8x128xf32>
    %c0_6 = arith.constant 0 : index
    %c0_7 = arith.constant 0 : index
    %20 = vector.load %arg2[%c0_6, %c0_7] : memref<1x128xf32, #tpu.memory_space<vmem>>, vector<1x128xf32>
    %21 = vector.broadcast %20 : vector<1x128xf32> to vector<8x128xf32>
    %22 = arith.mulf %19, %21 : vector<8x128xf32>
    %c0_8 = arith.constant 0 : index
    %c0_9 = arith.constant 0 : index
    %23 = vector.load %arg3[%c0_8, %c0_9] : memref<1x128xf32, #tpu.memory_space<vmem>>, vector<1x128xf32>
    %24 = vector.broadcast %23 : vector<1x128xf32> to vector<8x128xf32>
    %25 = arith.addf %22, %24 : vector<8x128xf32>
    %c0_10 = arith.constant 0 : index
    %c0_11 = arith.constant 0 : index
    %26 = vector.load %arg4[%c0_10, %c0_11] : memref<128x384xf32, #tpu.memory_space<vmem>>, vector<128x384xf32>
    %cst_12 = arith.constant dense<0.000000e+00> : vector<8x384xf32>
    %27 = tpu.matmul %25, %26, %cst_12 {dimension_numbers = #tpu.dot_dimension_numbers<[1], [0], [0], [1], [0, 0, 1, 1], [], []>} : vector<8x128xf32>, vector<128x384xf32>, vector<8x384xf32> -> vector<8x384xf32>
    %28 = vector.extract_strided_slice %27 {offsets = [0, 0], sizes = [8, 32], strides = [1, 1]} : vector<8x384xf32> to vector<8x32xf32>
    %29 = vector.extract_strided_slice %27 {offsets = [0, 32], sizes = [8, 32], strides = [1, 1]} : vector<8x384xf32> to vector<8x32xf32>
    %30 = vector.extract_strided_slice %27 {offsets = [0, 64], sizes = [8, 32], strides = [1, 1]} : vector<8x384xf32> to vector<8x32xf32>
    %31 = vector.extract_strided_slice %27 {offsets = [0, 96], sizes = [8, 32], strides = [1, 1]} : vector<8x384xf32> to vector<8x32xf32>
    %32 = vector.shape_cast %28 : vector<8x32xf32> to vector<1x8x32xf32>
    %33 = vector.shape_cast %29 : vector<8x32xf32> to vector<1x8x32xf32>
    %34 = vector.shape_cast %30 : vector<8x32xf32> to vector<1x8x32xf32>
    %35 = vector.shape_cast %31 : vector<8x32xf32> to vector<1x8x32xf32>
    %36 = tpu.concatenate %32, %33, %34, %35 in 0 : vector<1x8x32xf32>, vector<1x8x32xf32>, vector<1x8x32xf32>, vector<1x8x32xf32> -> vector<4x8x32xf32>
    %37 = vector.extract_strided_slice %27 {offsets = [0, 128], sizes = [8, 32], strides = [1, 1]} : vector<8x384xf32> to vector<8x32xf32>
    %38 = vector.extract_strided_slice %27 {offsets = [0, 160], sizes = [8, 32], strides = [1, 1]} : vector<8x384xf32> to vector<8x32xf32>
    %39 = vector.extract_strided_slice %27 {offsets = [0, 192], sizes = [8, 32], strides = [1, 1]} : vector<8x384xf32> to vector<8x32xf32>
    %40 = vector.extract_strided_slice %27 {offsets = [0, 224], sizes = [8, 32], strides = [1, 1]} : vector<8x384xf32> to vector<8x32xf32>
    %41 = vector.shape_cast %37 : vector<8x32xf32> to vector<1x8x32xf32>
    %42 = vector.shape_cast %38 : vector<8x32xf32> to vector<1x8x32xf32>
    %43 = vector.shape_cast %39 : vector<8x32xf32> to vector<1x8x32xf32>
    %44 = vector.shape_cast %40 : vector<8x32xf32> to vector<1x8x32xf32>
    %45 = tpu.concatenate %41, %42, %43, %44 in 0 : vector<1x8x32xf32>, vector<1x8x32xf32>, vector<1x8x32xf32>, vector<1x8x32xf32> -> vector<4x8x32xf32>
    %46 = vector.extract_strided_slice %27 {offsets = [0, 256], sizes = [8, 32], strides = [1, 1]} : vector<8x384xf32> to vector<8x32xf32>
    %47 = vector.extract_strided_slice %27 {offsets = [0, 288], sizes = [8, 32], strides = [1, 1]} : vector<8x384xf32> to vector<8x32xf32>
    %48 = vector.extract_strided_slice %27 {offsets = [0, 320], sizes = [8, 32], strides = [1, 1]} : vector<8x384xf32> to vector<8x32xf32>
    %49 = vector.extract_strided_slice %27 {offsets = [0, 352], sizes = [8, 32], strides = [1, 1]} : vector<8x384xf32> to vector<8x32xf32>
    %50 = vector.shape_cast %46 : vector<8x32xf32> to vector<1x8x32xf32>
    %51 = vector.shape_cast %47 : vector<8x32xf32> to vector<1x8x32xf32>
    %52 = vector.shape_cast %48 : vector<8x32xf32> to vector<1x8x32xf32>
    %53 = vector.shape_cast %49 : vector<8x32xf32> to vector<1x8x32xf32>
    %54 = tpu.concatenate %50, %51, %52, %53 in 0 : vector<1x8x32xf32>, vector<1x8x32xf32>, vector<1x8x32xf32>, vector<1x8x32xf32> -> vector<4x8x32xf32>
    "tpu.trace_start"() <{level = 10 : i32, message = "hqd,hkd->hqk"}> : () -> ()
    %cst_13 = arith.constant dense<0.000000e+00> : vector<4x8x8xf32>
    %55 = tpu.matmul %36, %45, %cst_13 {dimension_numbers = #tpu.dot_dimension_numbers<[2], [2], [1], [1], [0, 0, 0, 1, 1, 1], [0], [0]>} : vector<4x8x32xf32>, vector<4x8x32xf32>, vector<4x8x8xf32> -> vector<4x8x8xf32>
    "tpu.trace_stop"() : () -> ()
    %cst_14 = arith.constant 0.176776692 : f32
    %56 = vector.broadcast %cst_14 : f32 to vector<4x8x8xf32>
    %57 = arith.mulf %55, %56 : vector<4x8x8xf32>
    %58 = tpu.iota {dimensions = array<i32: 0>} : vector<8x8xi32>
    %59 = tpu.iota {dimensions = array<i32: 1>} : vector<8x8xi32>
    %60 = arith.cmpi sge, %58, %59 : vector<8x8xi32>
    %cst_15 = arith.constant 0.000000e+00 : f32
    %cst_16 = arith.constant -1.000000e+30 : f32
    %61 = vector.broadcast %cst_15 : f32 to vector<8x8xf32>
    %62 = vector.broadcast %cst_16 : f32 to vector<8x8xf32>
    %63 = arith.select %60, %61, %62 : vector<8x8xi1>, vector<8x8xf32>
    %64 = vector.shape_cast %63 : vector<8x8xf32> to vector<1x8x8xf32>
    %65 = vector.broadcast %64 : vector<1x8x8xf32> to vector<4x8x8xf32>
    %66 = arith.addf %57, %65 : vector<4x8x8xf32>
    %cst_17 = arith.constant dense<0xFF800000> : vector<4x8xf32>
    %67 = vector.multi_reduction <maximumf>, %66, %cst_17 [2] : vector<4x8x8xf32> to vector<4x8xf32>
    %68 = vector.shape_cast %67 : vector<4x8xf32> to vector<4x8x1xf32>
    %69 = vector.broadcast %68 : vector<4x8x1xf32> to vector<4x8x8xf32>
    %70 = arith.subf %66, %69 : vector<4x8x8xf32>
    %71 = math.exp %70 : vector<4x8x8xf32>
    %cst_18 = arith.constant dense<0.000000e+00> : vector<4x8xf32>
    %72 = vector.multi_reduction <add>, %71, %cst_18 [2] : vector<4x8x8xf32> to vector<4x8xf32>
    %73 = vector.shape_cast %72 : vector<4x8xf32> to vector<4x8x1xf32>
    %74 = tpu.reciprocal %73 {approx = true} : vector<4x8x1xf32> -> vector<4x8x1xf32>
    %75 = arith.mulf %73, %74 : vector<4x8x1xf32>
    %cst_19 = arith.constant 2.000000e+00 : f32
    %76 = vector.broadcast %cst_19 : f32 to vector<4x8x1xf32>
    %77 = arith.subf %76, %75 : vector<4x8x1xf32>
    %78 = arith.mulf %74, %77 : vector<4x8x1xf32>
    %79 = vector.broadcast %78 : vector<4x8x1xf32> to vector<4x8x8xf32>
    %80 = arith.mulf %71, %79 : vector<4x8x8xf32>
    "tpu.trace_start"() <{level = 10 : i32, message = "hqk,hkd->hqd"}> : () -> ()
    %cst_20 = arith.constant dense<0.000000e+00> : vector<4x8x32xf32>
    %81 = tpu.matmul %80, %54, %cst_20 {dimension_numbers = #tpu.dot_dimension_numbers<[2], [1], [1], [2], [0, 0, 0, 1, 1, 2], [0], [0]>} : vector<4x8x8xf32>, vector<4x8x32xf32>, vector<4x8x32xf32> -> vector<4x8x32xf32>
    "tpu.trace_stop"() : () -> ()
    %82 = vector.extract_strided_slice %81 {offsets = [0, 0, 0], sizes = [1, 8, 32], strides = [1, 1, 1]} : vector<4x8x32xf32> to vector<1x8x32xf32>
    %83 = vector.shape_cast %82 : vector<1x8x32xf32> to vector<8x32xf32>
    %84 = vector.extract_strided_slice %81 {offsets = [1, 0, 0], sizes = [1, 8, 32], strides = [1, 1, 1]} : vector<4x8x32xf32> to vector<1x8x32xf32>
    %85 = vector.shape_cast %84 : vector<1x8x32xf32> to vector<8x32xf32>
    %86 = vector.extract_strided_slice %81 {offsets = [2, 0, 0], sizes = [1, 8, 32], strides = [1, 1, 1]} : vector<4x8x32xf32> to vector<1x8x32xf32>
    %87 = vector.shape_cast %86 : vector<1x8x32xf32> to vector<8x32xf32>
    %88 = vector.extract_strided_slice %81 {offsets = [3, 0, 0], sizes = [1, 8, 32], strides = [1, 1, 1]} : vector<4x8x32xf32> to vector<1x8x32xf32>
    %89 = vector.shape_cast %88 : vector<1x8x32xf32> to vector<8x32xf32>
    %90 = tpu.concatenate %83, %85, %87, %89 in 1 : vector<8x32xf32>, vector<8x32xf32>, vector<8x32xf32>, vector<8x32xf32> -> vector<8x128xf32>
    %c0_21 = arith.constant 0 : index
    %c0_22 = arith.constant 0 : index
    %91 = vector.load %arg5[%c0_21, %c0_22] : memref<128x128xf32, #tpu.memory_space<vmem>>, vector<128x128xf32>
    %cst_23 = arith.constant dense<0.000000e+00> : vector<8x128xf32>
    %92 = tpu.matmul %90, %91, %cst_23 {dimension_numbers = #tpu.dot_dimension_numbers<[1], [0], [0], [1], [0, 0, 1, 1], [], []>} : vector<8x128xf32>, vector<128x128xf32>, vector<8x128xf32> -> vector<8x128xf32>
    %c0_24 = arith.constant 0 : index
    %c0_25 = arith.constant 0 : index
    %93 = vector.load %arg6[%c0_24, %c0_25] : memref<1x128xf32, #tpu.memory_space<vmem>>, vector<1x128xf32>
    %94 = vector.broadcast %93 : vector<1x128xf32> to vector<8x128xf32>
    %95 = arith.addf %92, %94 : vector<8x128xf32>
    %96 = arith.addf %1, %95 : vector<8x128xf32>
    %cst_26 = arith.constant dense<0.000000e+00> : vector<8xf32>
    %97 = vector.multi_reduction <add>, %96, %cst_26 [1] : vector<8x128xf32> to vector<8xf32>
    %98 = vector.shape_cast %97 : vector<8xf32> to vector<8x1xf32>
    %cst_27 = arith.constant 1.280000e+02 : f32
    %99 = vector.broadcast %cst_27 : f32 to vector<8x1xf32>
    %100 = arith.divf %98, %99 : vector<8x1xf32>
    %101 = vector.broadcast %100 : vector<8x1xf32> to vector<8x128xf32>
    %102 = arith.subf %96, %101 : vector<8x128xf32>
    %103 = arith.mulf %102, %102 : vector<8x128xf32>
    %cst_28 = arith.constant dense<0.000000e+00> : vector<8xf32>
    %104 = vector.multi_reduction <add>, %103, %cst_28 [1] : vector<8x128xf32> to vector<8xf32>
    %105 = vector.shape_cast %104 : vector<8xf32> to vector<8x1xf32>
    %cst_29 = arith.constant 1.280000e+02 : f32
    %106 = vector.broadcast %cst_29 : f32 to vector<8x1xf32>
    %107 = arith.divf %105, %106 : vector<8x1xf32>
    %108 = vector.broadcast %100 : vector<8x1xf32> to vector<8x128xf32>
    %109 = arith.subf %96, %108 : vector<8x128xf32>
    %cst_30 = arith.constant 9.99999974E-6 : f32
    %110 = vector.broadcast %cst_30 : f32 to vector<8x1xf32>
    %111 = arith.addf %107, %110 : vector<8x1xf32>
    %112 = math.rsqrt %111 : vector<8x1xf32>
    %113 = vector.broadcast %112 : vector<8x1xf32> to vector<8x128xf32>
    %114 = arith.mulf %109, %113 : vector<8x128xf32>
    %c0_31 = arith.constant 0 : index
    %c0_32 = arith.constant 0 : index
    %115 = vector.load %arg7[%c0_31, %c0_32] : memref<1x128xf32, #tpu.memory_space<vmem>>, vector<1x128xf32>
    %116 = vector.broadcast %115 : vector<1x128xf32> to vector<8x128xf32>
    %117 = arith.mulf %114, %116 : vector<8x128xf32>
    %c0_33 = arith.constant 0 : index
    %c0_34 = arith.constant 0 : index
    %118 = vector.load %arg8[%c0_33, %c0_34] : memref<1x128xf32, #tpu.memory_space<vmem>>, vector<1x128xf32>
    %119 = vector.broadcast %118 : vector<1x128xf32> to vector<8x128xf32>
    %120 = arith.addf %117, %119 : vector<8x128xf32>
    %c0_35 = arith.constant 0 : index
    %c0_36 = arith.constant 0 : index
    %121 = vector.load %arg9[%c0_35, %c0_36] : memref<128x512xf32, #tpu.memory_space<vmem>>, vector<128x512xf32>
    %cst_37 = arith.constant dense<0.000000e+00> : vector<8x512xf32>
    %122 = tpu.matmul %120, %121, %cst_37 {dimension_numbers = #tpu.dot_dimension_numbers<[1], [0], [0], [1], [0, 0, 1, 1], [], []>} : vector<8x128xf32>, vector<128x512xf32>, vector<8x512xf32> -> vector<8x512xf32>
    %c0_38 = arith.constant 0 : index
    %c0_39 = arith.constant 0 : index
    %123 = vector.load %arg10[%c0_38, %c0_39] : memref<1x512xf32, #tpu.memory_space<vmem>>, vector<1x512xf32>
    %124 = vector.broadcast %123 : vector<1x512xf32> to vector<8x512xf32>
    %125 = arith.addf %122, %124 : vector<8x512xf32>
    %cst_40 = arith.constant 1.702000e+00 : f32
    %126 = vector.broadcast %cst_40 : f32 to vector<8x512xf32>
    %127 = arith.mulf %126, %125 : vector<8x512xf32>
    %128 = arith.negf %127 : vector<8x512xf32>
    %129 = math.exp %128 : vector<8x512xf32>
    %cst_41 = arith.constant 1.000000e+00 : f32
    %130 = vector.broadcast %cst_41 : f32 to vector<8x512xf32>
    %131 = arith.addf %130, %129 : vector<8x512xf32>
    %132 = arith.divf %130, %131 : vector<8x512xf32>
    %133 = arith.mulf %132, %125 : vector<8x512xf32>
    %c0_42 = arith.constant 0 : index
    %c0_43 = arith.constant 0 : index
    %134 = vector.load %arg11[%c0_42, %c0_43] : memref<512x128xf32, #tpu.memory_space<vmem>>, vector<512x128xf32>
    %cst_44 = arith.constant dense<0.000000e+00> : vector<8x128xf32>
    %135 = tpu.matmul %133, %134, %cst_44 {dimension_numbers = #tpu.dot_dimension_numbers<[1], [0], [0], [1], [0, 0, 1, 1], [], []>} : vector<8x512xf32>, vector<512x128xf32>, vector<8x128xf32> -> vector<8x128xf32>
    %c0_45 = arith.constant 0 : index
    %c0_46 = arith.constant 0 : index
    %136 = vector.load %arg12[%c0_45, %c0_46] : memref<1x128xf32, #tpu.memory_space<vmem>>, vector<1x128xf32>
    %137 = vector.broadcast %136 : vector<1x128xf32> to vector<8x128xf32>
    %138 = arith.addf %135, %137 : vector<8x128xf32>
    %139 = arith.addf %96, %138 : vector<8x128xf32>
    %c0_47 = arith.constant 0 : index
    %c0_48 = arith.constant 0 : index
    %c0_49 = arith.constant 0 : index
    %140 = vector.load %arg13[%c0_47, %c0_48, %c0_49] : memref<1x8x128xf32, #tpu.memory_space<vmem>>, vector<1x8x128xf32>
    %141 = vector.shape_cast %140 : vector<1x8x128xf32> to vector<8x128xf32>
    %142 = vector.shape_cast %139 : vector<8x128xf32> to vector<1x8x128xf32>
    tpu.vector_store %arg13[%c0_47, %c0_48, %c0_49], %142 {strides = array<i32>} : memref<1x8x128xf32, #tpu.memory_space<vmem>>, vector<1x8x128xf32>,
    return
  }
  func.func @transform_0(%arg0: i32) -> (i32, i32, i32) {
    %c0_i32 = arith.constant 0 : i32
    %c0_i32_0 = arith.constant 0 : i32
    %c0_i32_1 = arith.constant 0 : i32
    return %arg0, %c0_i32, %c0_i32_0 : i32, i32, i32
  }
  func.func @transform_1(%arg0: i32) -> (i32, i32) {
    %c0_i32 = arith.constant 0 : i32
    %c0_i32_0 = arith.constant 0 : i32
    %c0_i32_1 = arith.constant 0 : i32
    return %c0_i32, %c0_i32_0 : i32, i32
  }
  func.func @transform_2(%arg0: i32) -> (i32, i32) {
    %c0_i32 = arith.constant 0 : i32
    %c0_i32_0 = arith.constant 0 : i32
    %c0_i32_1 = arith.constant 0 : i32
    return %c0_i32, %c0_i32_0 : i32, i32
  }
  func.func @transform_3(%arg0: i32) -> (i32, i32) {
    %c0_i32 = arith.constant 0 : i32
    %c0_i32_0 = arith.constant 0 : i32
    %c0_i32_1 = arith.constant 0 : i32
    return %c0_i32, %c0_i32_0 : i32, i32
  }
  func.func @transform_4(%arg0: i32) -> (i32, i32) {
    %c0_i32 = arith.constant 0 : i32
    %c0_i32_0 = arith.constant 0 : i32
    %c0_i32_1 = arith.constant 0 : i32
    return %c0_i32, %c0_i32_0 : i32, i32
  }
  func.func @transform_5(%arg0: i32) -> (i32, i32) {
    %c0_i32 = arith.constant 0 : i32
    %c0_i32_0 = arith.constant 0 : i32
    %c0_i32_1 = arith.constant 0 : i32
    return %c0_i32, %c0_i32_0 : i32, i32
  }
  func.func @transform_6(%arg0: i32) -> (i32, i32) {
    %c0_i32 = arith.constant 0 : i32
    %c0_i32_0 = arith.constant 0 : i32
    %c0_i32_1 = arith.constant 0 : i32
    return %c0_i32, %c0_i32_0 : i32, i32
  }
  func.func @transform_7(%arg0: i32) -> (i32, i32) {
    %c0_i32 = arith.constant 0 : i32
    %c0_i32_0 = arith.constant 0 : i32
    %c0_i32_1 = arith.constant 0 : i32
    return %c0_i32, %c0_i32_0 : i32, i32
  }
  func.func @transform_8(%arg0: i32) -> (i32, i32) {
    %c0_i32 = arith.constant 0 : i32
    %c0_i32_0 = arith.constant 0 : i32
    %c0_i32_1 = arith.constant 0 : i32
    return %c0_i32, %c0_i32_0 : i32, i32
  }
  func.func @transform_9(%arg0: i32) -> (i32, i32) {
    %c0_i32 = arith.constant 0 : i32
    %c0_i32_0 = arith.constant 0 : i32
    %c0_i32_1 = arith.constant 0 : i32
    return %c0_i32, %c0_i32_0 : i32, i32
  }
  func.func @transform_10(%arg0: i32) -> (i32, i32) {
    %c0_i32 = arith.constant 0 : i32
    %c0_i32_0 = arith.constant 0 : i32
    %c0_i32_1 = arith.constant 0 : i32
    return %c0_i32, %c0_i32_0 : i32, i32
  }
  func.func @transform_11(%arg0: i32) -> (i32, i32) {
    %c0_i32 = arith.constant 0 : i32
    %c0_i32_0 = arith.constant 0 : i32
    %c0_i32_1 = arith.constant 0 : i32
    return %c0_i32, %c0_i32_0 : i32, i32
  }
  func.func @transform_12(%arg0: i32) -> (i32, i32, i32) {
    %c0_i32 = arith.constant 0 : i32
    %c0_i32_0 = arith.constant 0 : i32
    %c0_i32_1 = arith.constant 0 : i32
    return %arg0, %c0_i32, %c0_i32_0 : i32, i32, i32
  }
}

</mosaic_0001>

<bundles_post_ra>
// kernel: tpu_custom_call.1
= control target key start
LH: loop header
LB: loop body
LE: loop exit
PB: predicated region body
PF: predicated region fallthrough
CT: control target
= control target key end

     0   :  { %s3454_s0 = inlined_call_operand.hbm [shape: f32[2,8,128], index: 0, kind: input, shape index: {}]   ;;  %s3455_s1 = inlined_call_operand.vmem [shape: f32[1,128], index: 1, kind: input, shape index: {}]   ;;  %s3456_s2 = inlined_call_operand.vmem [shape: f32[1,128], index: 2, kind: input, shape index: {}]   ;;  %s3457_s3 = inlined_call_operand.hbm [shape: f32[128,384], index: 3, kind: input, shape index: {}]   ;;  %s3458_s4 = inlined_call_operand.hbm [shape: f32[128,128], index: 4, kind: input, shape index: {}]   ;;  %s3459_s5 = inlined_call_operand.vmem [shape: f32[1,128], index: 5, kind: input, shape index: {}]   ;;  %s3460_s6 = inlined_call_operand.vmem [shape: f32[1,128], index: 6, kind: input, shape index: {}]   ;;  %s3461_s7 = inlined_call_operand.vmem [shape: f32[1,128], index: 7, kind: input, shape index: {}]   ;;  %s3462_s8 = inlined_call_operand.hbm [shape: f32[128,512], index: 8, kind: input, shape index: {}]   ;;  %s3463_s9 = inlined_call_operand.vmem [shape: f32[1,512], index: 9, kind: input, shape index: {}]   ;;  %s3464_s10 = inlined_call_operand.hbm [shape: f32[512,128], index: 10, kind: input, shape index: {}]   ;;  %s3465_s11 = inlined_call_operand.vmem [shape: f32[1,128], index: 11, kind: input, shape index: {}]   ;;  %s3466_s12 = inlined_call_operand.hbm [shape: f32[2,8,128], index: 12, kind: output, shape index: {}]  }
   0x1   :  { %3471 = sst [smem:[#allocation16_spill]] %s3457_s3 }
   0x2   :  { %3472 = sst [smem:[#allocation17_spill]] %s3461_s7 }
   0x3   :  { %3473 = sst [smem:[#allocation18_spill]] %s3463_s9 }
   0x4   :  { %3474 = sst [smem:[#allocation19_spill]] %s3465_s11 }
   0x5   :  { %3475 = sst [smem:[#allocation20_spill]] %s3466_s12 }
   0x6   :  { %17 = vsyncpa [#allocation3], 0 }
   0x7   :  { %19 = vsyncpa [#allocation3 + $0x1], 0 }
   0x8   :  { %20 = vsyncpa [#allocation6], 0 }
   0x9   :  { %21 = vsyncpa [#allocation9], 0 }
   0xa   :  { %22 = vsyncpa [#allocation4], 0 }
   0xb   :  { %24 = vsyncpa [#allocation4 + $0x1], 0  ;;  %s3040_s21 = smov 0   ;;  %s3042_s22 = smov 0  }
   0xc   :  { %s3044_s23 = smov 0   ;;  %s3046_s24 = smov 0  }
   0xd LB: > { %s2956_s25 = smov [#allocation5]   ;;  %s3061_s27 = sadd.s32 4294967295, %s2954_s24   ;;  %s2954_s24 = sphi %s3046_s24, %s3501_s24   ;;  %s2950_s23 = sphi %s3044_s23, %s3500_s23   ;;  %s2946_s22 = sphi %s3042_s22, %s3499_s22   ;;  %s2942_s21 = sphi %s3040_s21, %s3498_s21  }
   0xe   : > { %s336_s26 = sshll.u32 %s2956_s25, 4  ;;  %p2123_p0 = scmp.ge.s32.totalorder %s2954_s24, 1  ;;  %s3066_s26 = int_to_ptr.vmem [resolvable:$true] %s336_s26 }
   0xf   : > { %p3468_p1 = scmp.eq.s32.totalorder %s3061_s27, 0  ;;  %p318_p2 = scmp.lt.s32.totalorder %s2954_s24, 3 }
  0x10   : > { %s2957_s29 = smov [#allocation8]   ;;  %s2958_s14 = smov [#allocation7]  }
  0x11   : > { %p3068_p3 = pnand %p2123_p0, %p318_p2  ;;  %s371_s30 = sshll.u32 %s2957_s29, 4  ;;  %s3081_s30 = int_to_ptr.vmem [resolvable:$true] %s371_s30 }
  0x12   : > { %s3083_s15 = sshll.u32 %s2958_s14, 4  ;;  %s3478_s3 = sld [smem:[#allocation16_spill]]  ;;  %s350_s15 = int_to_ptr.vmem [resolvable:$true] %s3083_s15 }
  0x13   : > { %s3476_s28 = scalar_select %p3068_p3, 1, 0 }
  0x14   : > { %p2622_p5 = pneg %p3068_p3 }
  0x16   : > { %p3077_p6 = pnand %p2622_p5, %p3468_p1 }
  0x18   : > { %s2738_s18 = scalar_lea.hbm %s3478_s3, 6144  ;;  %p3093_p8 = pneg %p3077_p6 }
  0x19   : > { %p2739_p7 = scmp.ne.s32.totalorder %s3478_s3, %s2738_s18  ;;  %p2745_p11 = scmp.lt.u32.totalorder %s2738_s18, %s3478_s3 }
  0x1b   : > { %p2741_p9 = pnand %p3093_p8, %p2739_p7 }
  0x1d   : > { %p2742_p10 = pneg %p2741_p9 }
  0x1f   : > { %p2747_p12 = pnand %p2745_p11, %p2742_p10 }
  0x21   : > { %2750 = shalt.err (!%p2747_p12)
}
  0x22   : > { %s2751_s16 = scalar_lea.vmem %s3066_s26, 6144  ;;  %p2759_p5 = scmp.lt.s32.totalorder %s3066_s26, %s3066_s26 }
  0x23   : > { %p2752_p13 = scmp.ne.s32.totalorder %s3066_s26, %s2751_s16  ;;  %p2760_p4 = scmp.lt.s32.totalorder %s2751_s16, %s2751_s16 }
  0x25   : > { %p2754_p0 = pnand %p2752_p13, %p3093_p8  ;;  %p2761_p7 = por %p2760_p4, %p2759_p5 }
  0x27   : > { %p2755_p2 = pneg %p2754_p0 }
  0x29   : > { %p2762_p9 = pnand %p2761_p7, %p2755_p2 }
  0x2b   : > { %2765 = shalt.err (!%p2762_p9)
}
  0x2c   : > { %s2959_s17 = smov 384   ;;  %s2960_s18 = smov 24  }
  0x2d   : > { %2625 = dma.hbm_to_vmem [thread:$0]  (!%p3077_p6), %s3478_s3, 6144, %s3066_s26, [#allocation6], %s2959_s17, %s2959_s17, %s2960_s18  }
  0x2e   : > { %s2766_s12 = scalar_lea.hbm %s3462_s8, 8192 }
  0x2f   : > { %p2767_p4 = scmp.ne.s32.totalorder %s3462_s8, %s2766_s12  ;;  %p2773_p12 = scmp.lt.u32.totalorder %s2766_s12, %s3462_s8 }
  0x31   : > { %p2769_p10 = pnand %p2767_p4, %p3093_p8 }
  0x33   : > { %p2770_p11 = pneg %p2769_p10 }
  0x35   : > { %p2775_p13 = pnand %p2773_p12, %p2770_p11 }
  0x37   : > { %2778 = shalt.err (!%p2775_p13)
}
  0x38   : > { %s2779_s26 = scalar_lea.vmem %s3081_s30, 8192  ;;  %p2787_p7 = scmp.lt.s32.totalorder %s3081_s30, %s3081_s30 }
  0x39   : > { %p2780_p0 = scmp.ne.s32.totalorder %s3081_s30, %s2779_s26  ;;  %p2788_p9 = scmp.lt.s32.totalorder %s2779_s26, %s2779_s26 }
  0x3b   : > { %p2782_p2 = pnand %p2780_p0, %p3093_p8  ;;  %p2789_p4 = por %p2788_p9, %p2787_p7 }
  0x3d   : > { %p2783_p5 = pneg %p2782_p2 }
  0x3f   : > { %p2790_p10 = pnand %p2789_p4, %p2783_p5 }
  0x41   : > { %2793 = shalt.err (!%p2790_p10)
}
  0x42   : > { %s2961_s9 = smov 512   ;;  %s2962_s7 = smov 32  }
  0x43   : > { %2631 = dma.hbm_to_vmem [thread:$0]  (!%p3077_p6), %s3462_s8, 8192, %s3081_s30, [#allocation9], %s2961_s9, %s2961_s9, %s2962_s7  }
  0x44   : > { %s2794_s19 = scalar_lea.hbm %s3458_s4, 2048 }
  0x45   : > { %p2795_p11 = scmp.ne.s32.totalorder %s3458_s4, %s2794_s19  ;;  %p2801_p0 = scmp.lt.u32.totalorder %s2794_s19, %s3458_s4 }
  0x47   : > { %p2797_p12 = pnand %p2795_p11, %p3093_p8 }
  0x49   : > { %p2798_p13 = pneg %p2797_p12 }
  0x4b   : > { %p2803_p2 = pnand %p2801_p0, %p2798_p13 }
  0x4d   : > { %2806 = shalt.err (!%p2803_p2)
}
  0x4e   : > { %s2807_s26 = scalar_lea.vmem %s350_s15, 2048  ;;  %p2815_p4 = scmp.lt.s32.totalorder %s350_s15, %s350_s15 }
  0x4f   : > { %p2808_p5 = scmp.ne.s32.totalorder %s350_s15, %s2807_s26  ;;  %p2816_p10 = scmp.lt.s32.totalorder %s2807_s26, %s2807_s26 }
  0x51   : > { %p2810_p7 = pnand %p2808_p5, %p3093_p8  ;;  %p2817_p1 = por %p2816_p10, %p2815_p4 }
  0x53   : > { %p2811_p9 = pneg %p2810_p7 }
  0x55   : > { %p2818_p3 = pnand %p2817_p1, %p2811_p9 }
  0x57   : > { %2821 = shalt.err (!%p2818_p3)
}
  0x58   : > { %s2963_s30 = smov 128   ;;  %s2964_s9 = smov 8  }
  0x59   : > { %2628 = dma.hbm_to_vmem [thread:$0]  (!%p3077_p6), %s3458_s4, 2048, %s350_s15, [#allocation6], %s2963_s30, %s2963_s30, %s2964_s9  }
  0x5a   : > { %s2965_s12 = smov [#allocation10]   ;;  %s2822_s20 = scalar_lea.hbm %s3464_s10, 8192 }
  0x5b   : > { %s387_s17 = sshll.u32 %s2965_s12, 4  ;;  %p2823_p1 = scmp.ne.s32.totalorder %s3464_s10, %s2822_s20  ;;  %s388_s17 = int_to_ptr.vmem [resolvable:$true] %s387_s17 }
  0x5c   : > { %p2829_p12 = scmp.lt.u32.totalorder %s2822_s20, %s3464_s10 }
  0x5d   : > { %p2825_p3 = pnand %p2823_p1, %p3093_p8 }
  0x5f   : > { %p2826_p11 = pneg %p2825_p3 }
  0x61   : > { %p2831_p13 = pnand %p2829_p12, %p2826_p11 }
  0x63   : > { %2834 = shalt.err (!%p2831_p13)
}
  0x64   : > { %s2835_s15 = scalar_lea.vmem %s388_s17, 8192  ;;  %p2843_p7 = scmp.lt.s32.totalorder %s388_s17, %s388_s17 }
  0x65   : > { %p2836_p0 = scmp.ne.s32.totalorder %s388_s17, %s2835_s15  ;;  %p2844_p9 = scmp.lt.s32.totalorder %s2835_s15, %s2835_s15 }
  0x67   : > { %p2838_p2 = pnand %p2836_p0, %p3093_p8  ;;  %p2845_p4 = por %p2844_p9, %p2843_p7 }
  0x69   : > { %p2839_p5 = pneg %p2838_p2 }
  0x6b   : > { %p2846_p10 = pnand %p2845_p4, %p2839_p5 }
  0x6d   : > { %2849 = shalt.err (!%p2846_p10)
}
  0x6e   : > { %2634 = dma.hbm_to_vmem [thread:$0]  (!%p3077_p6), %s3464_s10, 8192, %s388_s17, [#allocation9], %s2963_s30, %s2963_s30, %s2964_s9  }
  0x6f   : > { %s2122_s25 = sadd.s32 4294967294, %s2954_s24   ;;  %s3176_s13 = sadd.s32 1, %s2954_s24  }
  0x70   : > { %s34_s12 = ssub.s32 %s2954_s24, %s3176_s13  ;;  %s37_s18 = sadd.s32 1, %s2950_s23 }
  0x71   : > { %p35_p8 = scmp.eq.s32.totalorder %s34_s12, 0  ;;  %p44_p1 = scmp.ne.s32.totalorder %s2950_s23, %s2946_s22 }
  0x72   : > { %p45_p3 = scmp.eq.s32.totalorder %s2954_s24, 0  ;;  %p50_p11 = scmp.ne.s32.totalorder %s2946_s22, %s2942_s21 }
  0x73   : > { %s3187_s19 = scalar_select %p35_p8, %s2950_s23, %s37_s18  }
  0x74   : > { %p3189_p12 = por %p45_p3, %p44_p1  ;;  %p3481_p13 = scmp.eq.s32.totalorder %s3061_s27, 0 }
  0x75   : > { %p305_p0 = scmp.eq.s32.totalorder %s3061_s27, 1  ;;  %p311_p2 = scmp.eq.s32.totalorder %s2122_s25, 1 }
  0x76   : > { %p3195_p6 = por %p3481_p13, %p50_p11  ;;  %p2647_p5 = scmp.lt.s32.totalorder %s2954_s24, 2 }
  0x77   : > { %s404_s9 = sand.u32 1, %s2950_s23   ;;  %p3202_p7 = por %p305_p0, %p44_p1 }
  0x78   : > { %p3206_p9 = por %p311_p2, %p50_p11  ;;  %s2129_s14 = sshll.u32 %s404_s9, 3 }
  0x79   : > { %s3483_s17 = scalar_select %p3202_p7, 1, 0 }
  0x7a   : > { %s3484_s29 = scalar_select %p3206_p9, 1, 0 }
  0x7b   : > { %s2130_s16 = sshll.u32 %s2954_s24, 7  ;;  %s408_s11 = scalar_lea.vmem [#allocation2], %s2129_s14 }
  0x7c   : > { %s3214_s7 = scalar_lea.hbm %s3454_s0, %s2130_s16  ;;  %s415_s25 = sshll.u32 %s408_s11, 4  ;;  %s3216_s25 = int_to_ptr.vmem [resolvable:$true] %s415_s25 }
  0x7d   : > { %p3220_p4 = pnand %p2647_p5, %p3189_p12  ;;  %s405_s18 = scalar_lea.sflag [#allocation3], %s404_s9 }
  0x7e   : > { %s2850_s3 = scalar_lea.hbm %s3214_s7, 128  ;;  %s2855_s26 = scalar_lea.hbm %s3454_s0, 256 }
  0x7f   : > { %p2851_p10 = scmp.ne.s32.totalorder %s3214_s7, %s2850_s3  ;;  %p2852_p8 = pneg %p3220_p4 }
  0x80   : > { %p2856_p11 = scmp.lt.u32.totalorder %s3214_s7, %s3454_s0  ;;  %p2857_p12 = scmp.lt.u32.totalorder %s2855_s26, %s2850_s3 }
  0x81   : > { %p2853_p1 = pnand %p2852_p8, %p2851_p10  ;;  %p2859_p0 = scmp.lt.u32.totalorder %s2850_s3, %s3214_s7 }
  0x82   : > { %p2858_p13 = por %p2857_p12, %p2856_p11 }
  0x83   : > { %p2854_p3 = pneg %p2853_p1 }
  0x84   : > { %p2860_p2 = por %p2859_p0, %p2858_p13 }
  0x86   : > { %p2861_p5 = pnand %p2860_p2, %p2854_p3 }
  0x88   : > { %2864 = shalt.err (!%p2861_p5)
}
  0x89   : > { %s2865_s9 = scalar_lea.vmem %s3216_s25, 128  ;;  %s2966_s11 = smov [#allocation2]  }
  0x8a   : > { %p2866_p10 = scmp.ne.s32.totalorder %s3216_s25, %s2865_s9  ;;  %s2870_s14 = sshll.u32 %s2966_s11, 4  ;;  %s2871_s14 = int_to_ptr.vmem [resolvable:$false] %s2870_s14 }
  0x8b   : > { %s2872_s16 = scalar_lea.vmem %s2871_s14, 256  ;;  %p2873_p7 = scmp.lt.s32.totalorder %s3216_s25, %s2871_s14 }
  0x8c   : > { %p2868_p1 = pnand %p2866_p10, %p2852_p8  ;;  %p2874_p11 = scmp.lt.s32.totalorder %s2872_s16, %s2865_s9 }
  0x8e   : > { %p2869_p9 = pneg %p2868_p1  ;;  %p2875_p12 = por %p2874_p11, %p2873_p7 }
  0x90   : > { %p2876_p13 = pnand %p2875_p12, %p2869_p9 }
  0x92   : > { %2879 = shalt.err (!%p2876_p13)
}
  0x93   : > { %2638 = dma.hbm_to_vmem [thread:$0]  (!%p3220_p4), %s3214_s7, 128, %s3216_s25, %s405_s18  }
  0x94   : > { %p3486_p3 = scmp.ne.s32.totalorder %s3476_s28, 0 }
  0x95   : > { %s3252_s3 = sand.u32 (!%p3486_p3), 1, %s2946_s22  }
  0x96   : > { %424 = sbr.rel (%p3486_p3) target bundleno = 2736 (0xab0), region = 68  ;;  %s2132_s26 = sshll.u32 (!%p3486_p3), %s3252_s3, 3 }
  0x97   : > { %s427_s20 = scalar_lea.sflag (!%p3486_p3), [#allocation3], %s3252_s3  ;;  %s430_s15 = scalar_lea.vmem (!%p3486_p3), [#allocation2], %s2132_s26 }
  0x9d   : > { %2925 = dma.done.wait (%p3195_p6), %s427_s20, 128  }
  0x9e   : > { %2927 = vsyncadd (%p3195_p6), %s427_s20, 4294967168  ;;  %p3487_p7 = scmp.eq.s32.totalorder %s3061_s27, 0 }
  0xa0   : > { %2929 = dma.done.wait (%p3487_p7), [#allocation6], 8192   ;;  %p3488_p9 = pmov %p3487_p7 }
  0xa1   : > { %p3489_p4 = pmov %p3487_p7 }
  0xa2   : > { %2931 = vsyncadd (%p3488_p9), [#allocation6], 4294959104 }
  0xa3   : > { %2933 = dma.done.wait (%p3489_p4), [#allocation9], 16384   ;;  %p3490_p8 = pmov %p3489_p4 }
  0xa4   : > { %v3270_v0 = vld [vmem:[%s430_s15] sm:$0xff]  ;;  %v517_v1 = vld [vmem:[#allocation5 + $0x8] sm:$0xff]  ;;  %v520_v2 = vld [vmem:[#allocation5 + $0x20] sm:$0xff]  ;;  %v2967_v5 = vmov 0.0|0.0   ;;  %v2968_v57 = vmov 0.0   ;;  %vm2969_vm0 = vmmov 0  }
  0xa5   : > { %2935 = vsyncadd (%p3490_p8), [#allocation9], 4294950912  ;;  %488 = vadd.xlane.f32.xlu0 %v3270_v0  ;;  %v516_v3 = vld [vmem:[#allocation5] sm:$0xff]  ;;  %v2394_v4 = vpack.c.bf16 %v520_v2, %v517_v1  ;;  %2426 = vmatprep.subr.bf16.mxu1 %v2967_v5  ;;  %v519_v6 = vld [vmem:[#allocation5 + $0x18] sm:$0xff]  ;;  %vm729_vm1 = vcmask 261120   ;;  %s2970_s12 = smov 96  }
  0xa6   : > { %v518_v7 = vld [vmem:[#allocation5 + $0x10] sm:$0xff]  ;;  %v521_v8 = vld [vmem:[#allocation5 + $0x28] sm:$0xff]  ;;  %v2396_v9 = vpack.c.bf16 %v519_v6, %v516_v3  ;;  %v523_v11 = vld [vmem:[#allocation5 + $0x38] sm:$0xff]  ;;  %628 = vmatprep.mubr.f32.mxu0 %v2968_v57  ;;  %2316 = vmatprep.mubr.msk.f32.mxu1 %vm2969_vm0, %v2968_v57  ;;  %s2971_s18 = smov 64   ;;  %s2972_s9 = smov 32   ;;  %vm1040_vm3 = vcmask 64512  }
  0xa7   : > { %v2427_v10 = vpack.c.bf16 %v521_v8, %v518_v7  ;;  %v526_v12 = vld [vmem:[#allocation5 + $0x50] sm:$0xff]  ;;  %2395 = vmatprep.subr.bf16.mxu0 %v2394_v4  ;;  %v525_v15 = vld [vmem:[#allocation5 + $0x48] sm:$0xff]  ;;  %v524_v16 = vld [vmem:[#allocation5 + $0x40] sm:$0xff]  ;;  %vm1402_vm4 = vcmask 523264   ;;  %vm1404_vm5 = vcmask 785408   ;;  %s3491_s30 = sld [smem:[#allocation17_spill]] }
  0xa8   : > { %v522_v13 = vld [vmem:[#allocation5 + $0x30] sm:$0xff]  ;;  %v2398_v14 = vpack.c.bf16 %v526_v12, %v523_v11  ;;  %v527_v17 = vld [vmem:[#allocation5 + $0x58] sm:$0xff]  ;;  %2397 = vmatpush1.bf16.msra.mxu0 %v2396_v9  ;;  %v529_v20 = vld [vmem:[#allocation5 + $0x68] sm:$0xff]  ;;  %s3493_s11 = sld [smem:[#allocation19_spill]]  ;;  %s2161_s14 = sshll.u32 %s3061_s27, 7 }
  0xa9   : > { %2428 = vmatpush3.bf16.msra.mxu1 %v2427_v10  ;;  %v2400_v18 = vpack.c.bf16 %v525_v15, %v522_v13  ;;  %v2430_v19 = vpack.c.bf16 %v527_v17, %v524_v16  ;;  %v532_v21 = vld [vmem:[#allocation5 + $0x80] sm:$0xff]  ;;  %v531_v24 = vld [vmem:[#allocation5 + $0x78] sm:$0xff]  ;;  %v530_v25 = vld [vmem:[#allocation5 + $0x70] sm:$0xff]  ;;  %s486_s16 = scalar_lea.vmem [#allocation11], %s2132_s26  ;;  %s2001_s25 = scalar_lea.sflag [#allocation4], %s3252_s3 }
  0xaa   : > { %v528_v22 = vld [vmem:[#allocation5 + $0x60] sm:$0xff]  ;;  %2399 = vmatprep.subr.bf16.mxu0 %v2398_v14  ;;  %2429 = vmatprep.subr.bf16.mxu1 %v2967_v5  ;;  %v2402_v23 = vpack.c.bf16 %v532_v21, %v529_v20  ;;  %v533_v26 = vld [vmem:[#allocation5 + $0x88] sm:$0xff]  ;;  %v535_v33 = vld [vmem:[#allocation5 + $0x98] sm:$0xff]  ;;  %s2014_s20 = sshll.u32 %s486_s16, 4  ;;  %p3495_p0 = scmp.ne.s32.totalorder %s3483_s17, 0  ;;  %s3412_s20 = int_to_ptr.vmem [resolvable:$true] %s2014_s20 }
  0xab   : > { %v2404_v27 = vpack.c.bf16 %v531_v24, %v528_v22  ;;  %v2433_v28 = vpack.c.bf16 %v533_v26, %v530_v25  ;;  %v538_v34 = vld [vmem:[#allocation5 + $0xb0] sm:$0xff]  ;;  %v537_v37 = vld [vmem:[#allocation5 + $0xa8] sm:$0xff]  ;;  %v536_v38 = vld [vmem:[#allocation5 + $0xa0] sm:$0xff]  ;;  %s2974_s27 = smov [#allocation11]  }
  0xac   : > { %2401 = vmatpush1.bf16.msra.mxu0 %v2400_v18  ;;  %v2406_v35 = vpack.c.bf16 %v538_v34, %v535_v33  ;;  %v534_v36 = vld [vmem:[#allocation5 + $0x90] sm:$0xff]  ;;  %v539_v40 = vld [vmem:[#allocation5 + $0xb8] sm:$0xff]  ;;  %v541_v42 = vld [vmem:[#allocation5 + $0xc8] sm:$0xff]  ;;  %s2884_s26 = sshll.u32 %s2974_s27, 4  ;;  %s2885_s26 = int_to_ptr.vmem [resolvable:$false] %s2884_s26 }
  0xad   : > { %2431 = vmatpush3.bf16.msra.mxu1 %v2430_v19  ;;  %2403 = vmatprep.subr.bf16.mxu0 %v2402_v23  ;;  %v2408_v39 = vpack.c.bf16 %v537_v37, %v534_v36  ;;  %v2436_v41 = vpack.c.bf16 %v539_v40, %v536_v38  ;;  %v544_v43 = vld [vmem:[#allocation5 + $0xe0] sm:$0xff]  ;;  %v543_v46 = vld [vmem:[#allocation5 + $0xd8] sm:$0xff]  ;;  %v542_v47 = vld [vmem:[#allocation5 + $0xd0] sm:$0xff]  ;;  %v1030_v36 = vlaneseq  ;;  %v2973_v40 = vmov -1e+30   ;;  %p2887_p10 = scmp.lt.s32.totalorder %s3412_s20, %s2885_s26 }
  0xae   : > { %2432 = vmatprep.subr.bf16.mxu1 %v2967_v5  ;;  %v2410_v44 = vpack.c.bf16 %v544_v43, %v541_v42  ;;  %v540_v45 = vld [vmem:[#allocation5 + $0xc0] sm:$0xff]  ;;  %v545_v49 = vld [vmem:[#allocation5 + $0xe8] sm:$0xff]  ;;  %v547_v50 = vld [vmem:[#allocation5 + $0xf8] sm:$0xff] }
  0xaf   : > { %v2412_v48 = vpack.c.bf16 %v543_v46, %v540_v45  ;;  %v550_v51 = vld [vmem:[#allocation5 + $0x110] sm:$0xff]  ;;  %v2439_v52 = vpack.c.bf16 %v545_v49, %v542_v47  ;;  %v549_v55 = vld [vmem:[#allocation5 + $0x108] sm:$0xff]  ;;  %v548_v56 = vld [vmem:[#allocation5 + $0x100] sm:$0xff]  ;;  %v3332_v37 = vshrl.u32 %v1030_v36, 7  ;;  %v1033_v38 = vand.u32 127, %v1030_v36 }
  0xb0   : > { %2405 = vmatpush1.bf16.msra.mxu0 %v2404_v27  ;;  %v2414_v53 = vpack.c.bf16 %v550_v51, %v547_v50  ;;  %v546_v54 = vld [vmem:[#allocation5 + $0xf0] sm:$0xff]  ;;  %v551_v59 = vld [vmem:[#allocation5 + $0x118] sm:$0xff]  ;;  %v553_v60 = vld [vmem:[#allocation5 + $0x128] sm:$0xff] }
  0xb1   : > { %2434 = vmatpush3.bf16.msra.mxu1 %v2433_v28  ;;  %2407 = vmatprep.subr.bf16.mxu0 %v2406_v35  ;;  %v2416_v58 = vpack.c.bf16 %v549_v55, %v546_v54  ;;  %v556_v61 = vld [vmem:[#allocation5 + $0x140] sm:$0xff]  ;;  %v2442_v62 = vpack.c.bf16 %v551_v59, %v548_v56  ;;  %v555_v2 = vld [vmem:[#allocation5 + $0x138] sm:$0xff]  ;;  %v554_v3 = vld [vmem:[#allocation5 + $0x130] sm:$0xff]  ;;  %vm1034_vm2 = vcmp.ge.s32.totalorder %v3332_v37, %v1033_v38 }
  0xb2   : > { %2435 = vmatprep.subr.bf16.mxu1 %v2967_v5  ;;  %v2418_v63 = vpack.c.bf16 %v556_v61, %v553_v60  ;;  %v552_v1 = vld [vmem:[#allocation5 + $0x120] sm:$0xff]  ;;  %v557_v4 = vld [vmem:[#allocation5 + $0x148] sm:$0xff]  ;;  %v559_v6 = vld [vmem:[#allocation5 + $0x158] sm:$0xff] }
  0xb3   : > { %v562_v7 = vld [vmem:[#allocation5 + $0x170] sm:$0xff]  ;;  %v2420_v8 = vpack.c.bf16 %v555_v2, %v552_v1  ;;  %v2445_v9 = vpack.c.bf16 %v557_v4, %v554_v3  ;;  %v561_v12 = vld [vmem:[#allocation5 + $0x168] sm:$0xff]  ;;  %v560_v13 = vld [vmem:[#allocation5 + $0x160] sm:$0xff] }
  0xb4   : > { %2409 = vmatpush1.bf16.msra.mxu0 %v2408_v39  ;;  %v2422_v10 = vpack.c.bf16 %v562_v7, %v559_v6  ;;  %v558_v11 = vld [vmem:[#allocation5 + $0x150] sm:$0xff]  ;;  %v563_v14 = vld [vmem:[#allocation5 + $0x178] sm:$0xff] }
  0xb5   : > { %2437 = vmatpush3.bf16.msra.mxu1 %v2436_v41  ;;  %2411 = vmatprep.subr.bf16.mxu0 %v2410_v44  ;;  %v2424_v15 = vpack.c.bf16 %v561_v12, %v558_v11  ;;  %v2448_v16 = vpack.c.bf16 %v563_v14, %v560_v13  ;;  %v2138_v21 = vld [vmem:[%s3455_s1] ss:$0 sm:$0xff]  ;;  %v1035_v41 = vsel %vm1034_vm2, 0.0, %v2973_v40 }
  0xb6   : > { %2438 = vmatprep.subr.bf16.mxu1 %v2967_v5  ;;  %v2139_v23 = vld [vmem:[%s3456_s2] ss:$0 sm:$0xff] }
  0xb8   : > { %2413 = vmatpush1.bf16.msra.mxu0 %v2412_v48 }
  0xb9   : > { %2440 = vmatpush3.bf16.msra.mxu1 %v2439_v52  ;;  %2415 = vmatprep.subr.bf16.mxu0 %v2414_v53 }
  0xba   : > { %2441 = vmatprep.subr.bf16.mxu1 %v2967_v5 }
  0xbc   : > { %2417 = vmatpush1.bf16.msra.mxu0 %v2416_v58 }
  0xbd   : > { %2443 = vmatpush3.bf16.msra.mxu1 %v2442_v62  ;;  %2419 = vmatprep.subr.bf16.mxu0 %v2418_v63 }
  0xbe   : > { %2444 = vmatprep.subr.bf16.mxu1 %v2967_v5 }
  0xc0   : > { %2421 = vmatpush1.bf16.msra.mxu0 %v2420_v8 }
  0xc1   : > { %2446 = vmatpush3.bf16.msra.mxu1 %v2445_v9  ;;  %2423 = vmatprep.subr.bf16.mxu0 %v2422_v10 }
  0xc2   : > { %2447 = vmatprep.subr.bf16.mxu1 %v2967_v5 }
  0xc4   : > { %2425 = vmatpush1.bf16.msra.mxu0 %v2424_v15 }
  0xc5   : > { %2449 = vmatpush3.bf16.msra.mxu1 %v2448_v16  ;;  %2450 = vmatprep.subr.bf16.mxu0 %v2967_v5 }
  0xc6   : > { %2319 = vmatprep.subr.mxu1 %v2968_v57 }
 0x132   : > { %v489_v29 = vpop.xlane.xlu0 %488 }
 0x133   : > { %v491_v30 = vmul.f32 0.0078125, %v489_v29 }
 0x135   : > { %v3278_v31 = vsub.f32 %v3270_v0, %v491_v30 }
 0x137   : > { %v493_v32 = vmul.f32 %v3278_v31, %v3278_v31 }
 0x139   : > { %494 = vadd.xlane.f32.xlu0 %v493_v32 }
 0x1c6   : > { %v495_v17 = vpop.xlane.xlu0 %494 }
 0x1c7   : > { %v496_v18 = vmul.f32 0.0078125, %v495_v17 }
 0x1c9   : > { %v497_v19 = vadd.f32 1e-05, %v496_v18 }
 0x1cb   : > { %2702 = vrsqrt.f32 %v497_v19 }
 0x1d5   : > { %v2703_v20 = vpop.eup %2702 }
 0x1d6   : > { %v499_v22 = vmul.f32 %v2703_v20, %v3278_v31 }
 0x1d8   : > { %v507_v24 = vmul.f32 %v2138_v21, %v499_v22 }
 0x1da   : > { %v515_v25 = vadd.f32 %v2139_v23, %v507_v24 }
 0x1dc   : > { %629 = vmatmul.mubr.f32.vlgmr.msra.gmra.mrb[0].mxu0 %v515_v25  ;;  %2317 = vmatmul.mubr.f32.vlgmr.msra.gmra.mrb[0].mxu1 %v515_v25 }
 0x1dd   : > { %2321 = vmatprep.mubr.msk.f32.mxu1 %vm2969_vm0, %v2968_v57  ;;  %2391 = vmatprep.mubr.msk.f32.mxu0 %vm2969_vm0, %v2968_v57 }
 0x2af   : > { %v630_v26 = vpop.f32.mrb[0].mxu0  ;;  %v3302_v27 = vpop.f32.mrb[0].mxu1 }
 0x2b0   : > { %v2318_v28 = vpop.f32.mrb[1].mxu1  ;;  %706 = vrot.lane.b32.xlu1 %v630_v26, %s2970_s12  ;;  %v632_v29 = vpop.f32.mrb[1].mxu0 }
 0x2b1   : > { %715 = vrot.lane.b32.xlu0 %v632_v29, %s2971_s18  ;;  %2320 = vmatpush3.xpose.msk.msra.mxu1 %vm729_vm1, %v632_v29 }
 0x2b2   : > { %2324 = vmatprep.subr.mxu1 %v2968_v57 }
 0x2b4   : > { %713 = vrot.lane.b32.xlu1 %v632_v29, %s2970_s12  ;;  %2322 = vmatmul.mubr.msk.f32.vlgmr.msra.gmra.mrb[2].mxu1 %vm729_vm1, %v630_v26 }
 0x2b5   : > { %2326 = vmatprep.mubr.msk.f32.mxu1 %vm2969_vm0, %v2968_v57 }
 0x2b8   : > { %708 = vrot.lane.b32.xlu1 %v630_v26, %s2971_s18 }
 0x2bc   : > { %717 = vrot.lane.b32.xlu1 %v632_v29, %s2972_s9 }
 0x2c0   : > { %710 = vrot.lane.b32.xlu1 %v630_v26, %s2972_s9 }
 0x322   : > { %v707_v30 = vpop.permute.xlu1 %706 }
 0x323   : > { %v716_v32 = vpop.permute.xlu0 %715 }
 0x326   : > { %v714_v31 = vpop.permute.xlu1 %713 }
 0x327   : > { %2325 = vmatpush3.xpose.msk.msra.mxu1 %vm729_vm1, %v714_v31 }
 0x328   : > { %2329 = vmatprep.subr.mxu1 %v2968_v57 }
 0x32a   : > { %v709_v33 = vpop.permute.xlu1 %708  ;;  %2327 = vmatmul.mubr.msk.f32.vlgmr.msra.gmra.mrb[4].mxu1 %vm729_vm1, %v707_v30 }
 0x32b   : > { %2330 = vmatpush3.xpose.msk.msra.mxu1 %vm729_vm1, %v716_v32  ;;  %2331 = vmatprep.mubr.msk.f32.mxu1 %vm2969_vm0, %v2968_v57 }
 0x32c   : > { %2334 = vmatprep.subr.mxu1 %v2968_v57 }
 0x32e   : > { %v718_v34 = vpop.permute.xlu1 %717  ;;  %2332 = vmatmul.mubr.msk.f32.vlgmr.msra.gmra.mrb[6].mxu1 %vm729_vm1, %v709_v33 }
 0x32f   : > { %2335 = vmatpush3.xpose.msk.msra.mxu1 %vm729_vm1, %v718_v34  ;;  %2336 = vmatprep.mubr.msk.f32.mxu1 %vm2969_vm0, %v2968_v57 }
 0x330   : > { %2339 = vmatprep.subr.mxu1 %v2968_v57 }
 0x332   : > { %v711_v35 = vpop.permute.xlu1 %710 }
 0x333   : > { %2337 = vmatmul.mubr.msk.f32.vlgmr.msra.gmra.mrb[8].mxu1 %vm729_vm1, %v711_v35 }
 0x334   : > { %2340 = vmatpush3.msra.mxu1 %v3302_v27  ;;  %2341 = vmatprep.mubr.msk.f32.mxu1 %vm2969_vm0, %v2968_v57 }
 0x335   : > { %2344 = vmatprep.subr.mxu1 %v2968_v57 }
 0x387   : > { %v800_v39 = vpop.f32.mrb[2].mxu1 }
 0x388   : > { %v1026_v42 = vmul.f32 0.17677669, %v800_v39  ;;  %v2323_v43 = vpop.f32.mrb[3].mxu1 }
 0x38a   : > { %v1036_v44 = vadd.f32 %v1035_v41, %v1026_v42 }
 0x38c   : > { %v1041_v45 = vsel %vm1040_vm3, %v1036_v44, -inf }
 0x38d   : > { %1042 = vmax.xlane.f32.xlu1 %v1041_v45 }
 0x3fd   : > { %v874_v46 = vpop.f32.mrb[4].mxu1 }
 0x3fe   : > { %v1027_v47 = vmul.f32 0.17677669, %v874_v46  ;;  %v2328_v48 = vpop.f32.mrb[5].mxu1 }
 0x400   : > { %v1037_v49 = vadd.f32 %v1035_v41, %v1027_v47 }
 0x401   : > { %v948_v50 = vpop.f32.mrb[6].mxu1 }
 0x402   : > { %v1028_v51 = vmul.f32 0.17677669, %v948_v50  ;;  %v2333_v52 = vpop.f32.mrb[7].mxu1  ;;  %v1044_v53 = vsel %vm1040_vm3, %v1037_v49, -inf  ;;  %v1406_v50 = vld [vmem:[#allocation7] sm:$0xff] }
 0x403   : > { %1045 = vmax.xlane.f32.xlu0 %v1044_v53  ;;  %v1408_v52 = vld [vmem:[#allocation7 + $0x10] sm:$0xff] }
 0x404   : > { %v1038_v54 = vadd.f32 %v1035_v41, %v1028_v51  ;;  %v1407_v51 = vld [vmem:[#allocation7 + $0x8] sm:$0xff] }
 0x405   : > { %v2451_v53 = vpack.c.bf16 %v1407_v51, %v1406_v50  ;;  %v1541_v50 = vld [vmem:[#allocation8 + $0x70] sm:$0xff]  ;;  %v1544_v51 = vld [vmem:[#allocation8 + $0x88] sm:$0xff] }
 0x406   : > { %v1022_v55 = vpop.f32.mrb[8].mxu1  ;;  %v1047_v56 = vsel %vm1040_vm3, %v1038_v54, -inf }
 0x407   : > { %v1029_v58 = vmul.f32 0.17677669, %v1022_v55  ;;  %1048 = vmax.xlane.f32.xlu1 %v1047_v56  ;;  %v2338_v59 = vpop.f32.mrb[9].mxu1  ;;  %2452 = vmatpush3.bf16.msra.mxu0 %v2451_v53  ;;  %v1410_v56 = vld [vmem:[#allocation7 + $0x20] sm:$0xff] }
 0x408   : > { %2453 = vmatprep.subr.bf16.mxu0 %v2967_v5 }
 0x409   : > { %v1039_v60 = vadd.f32 %v1035_v41, %v1029_v58  ;;  %v1411_v58 = vld [vmem:[#allocation7 + $0x28] sm:$0xff] }
 0x40a   : > { %v2457_v59 = vpack.c.bf16 %v1411_v58, %v1410_v56  ;;  %v1550_v56 = vld [vmem:[#allocation8 + $0xb8] sm:$0xff]  ;;  %v1543_v58 = vld [vmem:[#allocation8 + $0x80] sm:$0xff] }
 0x40b   : > { %v1050_v61 = vsel %vm1040_vm3, %v1039_v60, -inf }
 0x40c   : > { %1051 = vmax.xlane.f32.xlu1 %v1050_v61  ;;  %v1412_v61 = vld [vmem:[#allocation7 + $0x30] sm:$0xff] }
 0x41a   : > { %v1043_v62 = vpop.xlane.xlu1 %1042 }
 0x41b   : > { %v1053_v63 = vsub.f32 %v1036_v44, %v1043_v62  ;;  %v1413_v62 = vld [vmem:[#allocation7 + $0x38] sm:$0xff] }
 0x41d   : > { %v1057_v1 = vmul.f32 1.442695, %v1053_v63 }
 0x41f   : > { %2704 = vpow2.f32 %v1057_v1  ;;  %v2460_v1 = vpack.c.bf16 %v1413_v62, %v1412_v61  ;;  %v1545_v61 = vld [vmem:[#allocation8 + $0x90] sm:$0xff] }
 0x420   : > { %v1549_v62 = vld [vmem:[#allocation8 + $0xb0] sm:$0xff] }
 0x429   : > { %v2705_v2 = vpop.eup %2704 }
 0x42a   : > { %v1065_v3 = vsel %vm1040_vm3, %v2705_v2, 0.0 }
 0x42b   : > { %1066 = vadd.xlane.f32.xlu0 %v1065_v3  ;;  %v1414_v3 = vld [vmem:[#allocation7 + $0x40] sm:$0xff] }
 0x490   : > { %v1046_v4 = vpop.xlane.xlu0 %1045 }
 0x491   : > { %v1054_v6 = vsub.f32 %v1037_v49, %v1046_v4  ;;  %v1415_v4 = vld [vmem:[#allocation7 + $0x48] sm:$0xff] }
 0x493   : > { %v1059_v7 = vmul.f32 1.442695, %v1054_v6 }
 0x494   : > { %v1049_v8 = vpop.xlane.xlu1 %1048 }
 0x495   : > { %2706 = vpow2.f32 %v1059_v7  ;;  %v1055_v9 = vsub.f32 %v1038_v54, %v1049_v8  ;;  %v1409_v54 = vld [vmem:[#allocation7 + $0x18] sm:$0xff]  ;;  %v2463_v7 = vpack.c.bf16 %v1415_v4, %v1414_v3  ;;  %v1416_v8 = vld [vmem:[#allocation7 + $0x50] sm:$0xff] }
 0x496   : > { %v2454_v55 = vpack.c.bf16 %v1409_v54, %v1408_v52  ;;  %v1548_v52 = vld [vmem:[#allocation8 + $0xa8] sm:$0xff] }
 0x497   : > { %v1061_v10 = vmul.f32 1.442695, %v1055_v9  ;;  %v1417_v9 = vld [vmem:[#allocation7 + $0x58] sm:$0xff]  ;;  %v2482_v54 = vpack.c.bf16 %v1548_v52, %v1544_v51  ;;  %v1581_v51 = vld [vmem:[#allocation8 + $0x1b0] sm:$0xff] }
 0x498   : > { %2455 = vmatpush3.bf16.msra.mxu0 %v2454_v55  ;;  %v1546_v55 = vld [vmem:[#allocation8 + $0x98] sm:$0xff] }
 0x499   : > { %2708 = vpow2.f32 %v1061_v10  ;;  %v1052_v16 = vpop.xlane.xlu1 %1051  ;;  %2456 = vmatprep.subr.bf16.mxu0 %v2967_v5  ;;  %v2466_v10 = vpack.c.bf16 %v1417_v9, %v1416_v8  ;;  %v1556_v8 = vld [vmem:[#allocation8 + $0xe8] sm:$0xff]  ;;  %v1554_v9 = vld [vmem:[#allocation8 + $0xd8] sm:$0xff] }
 0x49a   : > { %v1056_v17 = vsub.f32 %v1039_v60, %v1052_v16 }
 0x49c   : > { %v1063_v19 = vmul.f32 1.442695, %v1056_v17  ;;  %2458 = vmatpush3.bf16.msra.mxu0 %v2457_v59  ;;  %v2514_v59 = vpack.c.bf16 %v1550_v56, %v1546_v55  ;;  %v1586_v55 = vld [vmem:[#allocation8 + $0x1d8] sm:$0xff] }
 0x49d   : > { %2459 = vmatprep.subr.bf16.mxu0 %v2967_v5 }
 0x49f   : > { %v2707_v11 = vpop.eup %2706 }
 0x4a0   : > { %v1068_v12 = vsel %vm1040_vm3, %v2707_v11, 0.0  ;;  %2461 = vmatpush3.bf16.msra.mxu0 %v2460_v1  ;;  %v2516_v1 = vpack.c.bf16 %v1549_v62, %v1545_v61  ;;  %v1587_v61 = vld [vmem:[#allocation8 + $0x1e0] sm:$0xff] }
 0x4a1   : > { %1069 = vadd.xlane.f32.xlu1 %v1068_v12  ;;  %2462 = vmatprep.subr.bf16.mxu0 %v2967_v5  ;;  %v1419_v12 = vld [vmem:[#allocation7 + $0x68] sm:$0xff] }
 0x4a3   : > { %v2709_v13 = vpop.eup %2708 }
 0x4a4   : > { %v1071_v14 = vsel %vm1040_vm3, %v2709_v13, 0.0  ;;  %2464 = vmatpush3.bf16.msra.mxu0 %v2463_v7  ;;  %v1552_v7 = vld [vmem:[#allocation8 + $0xc8] sm:$0xff] }
 0x4a5   : > { %1072 = vadd.xlane.f32.xlu0 %v1071_v14  ;;  %2465 = vmatprep.subr.bf16.mxu0 %v2967_v5  ;;  %v1420_v14 = vld [vmem:[#allocation7 + $0x70] sm:$0xff] }
 0x4a8   : > { %2467 = vmatpush3.bf16.msra.mxu0 %v2466_v10  ;;  %v2486_v10 = vpack.c.bf16 %v1556_v8, %v1552_v7 }
 0x4a9   : > { %2468 = vmatprep.subr.bf16.mxu0 %v2967_v5 }
 0x4b2   : > { %723 = vrot.lane.b32.xlu1 %v3302_v27, %s2971_s18 }
 0x4b8   : > { %v1067_v15 = vpop.xlane.xlu0 %1066 }
 0x4b9   : > { %2710 = vrcp.f32 %v1067_v15 }
 0x4ba   : > { %2712 = vpow2.f32 %v1063_v19 }
 0x4bb   : > { %720 = vrot.lane.b32.xlu0 %v3302_v27, %s2970_s12 }
 0x4c3   : > { %v2711_v18 = vpop.eup %2710 }
 0x4c4   : > { %v1081_v20 = vmul.f32 %v2711_v18, %v1067_v15  ;;  %v2713_v24 = vpop.eup %2712  ;;  %v1421_v15 = vld [vmem:[#allocation7 + $0x78] sm:$0xff] }
 0x4c5   : > { %v1074_v25 = vsel %vm1040_vm3, %v2713_v24, 0.0  ;;  %v2472_v16 = vpack.c.bf16 %v1421_v15, %v1420_v14 }
 0x4c6   : > { %v1085_v21 = vsub.f32 2.0, %v1081_v20 }
 0x4c8   : > { %v1089_v22 = vmul.f32 %v2711_v18, %v1085_v21 }
 0x4ca   : > { %v1093_v23 = vmul.f32 %v2705_v2, %v1089_v22 }
 0x4cc   : > { %2342 = vmatmul.mubr.msk.f32.vlgmr.msra.gmra.mrb[10].mxu1 %vm1040_vm3, %v1093_v23 }
 0x4cd   : > { %2346 = vmatprep.mubr.msk.f32.mxu1 %vm2969_vm0, %v2968_v57 }
 0x4d6   : > { %1075 = vadd.xlane.f32.xlu1 %v1074_v25 }
 0x4e7   : > { %726 = vrot.lane.b32.xlu1 %v3302_v27, %s2972_s9 }
 0x52e   : > { %v1070_v26 = vpop.xlane.xlu1 %1069 }
 0x52f   : > { %2714 = vrcp.f32 %v1070_v26 }
 0x532   : > { %v1073_v28 = vpop.xlane.xlu0 %1072  ;;  %v724_v40 = vpop.permute.xlu1 %723 }
 0x533   : > { %2716 = vrcp.f32 %v1073_v28 }
 0x536   : > { %v721_v29 = vpop.permute.xlu0 %720 }
 0x537   : > { %2345 = vmatpush3.msra.mxu1 %v721_v29 }
 0x538   : > { %2349 = vmatprep.subr.mxu1 %v2968_v57 }
 0x539   : > { %v2715_v30 = vpop.eup %2714 }
 0x53a   : > { %v1082_v31 = vmul.f32 %v2715_v30, %v1070_v26 }
 0x53c   : > { %v1086_v32 = vsub.f32 2.0, %v1082_v31  ;;  %v1532_v31 = vld [vmem:[#allocation8 + $0x28] sm:$0xff] }
 0x53d   : > { %v2717_v33 = vpop.eup %2716 }
 0x53e   : > { %v1090_v34 = vmul.f32 %v2715_v30, %v1086_v32  ;;  %v1083_v35 = vmul.f32 %v2717_v33, %v1073_v28  ;;  %v1528_v30 = vld [vmem:[#allocation8 + $0x8] sm:$0xff]  ;;  %v1530_v32 = vld [vmem:[#allocation8 + $0x18] sm:$0xff] }
 0x540   : > { %v1094_v36 = vmul.f32 %v2707_v11, %v1090_v34  ;;  %v1087_v38 = vsub.f32 2.0, %v1083_v35  ;;  %v1418_v11 = vld [vmem:[#allocation7 + $0x60] sm:$0xff]  ;;  %v1534_v34 = vld [vmem:[#allocation8 + $0x38] sm:$0xff] }
 0x541   : > { %v1527_v35 = vld [vmem:[#allocation8] sm:$0xff] }
 0x542   : > { %v1091_v39 = vmul.f32 %v2717_v33, %v1087_v38  ;;  %2347 = vmatmul.mubr.msk.f32.vlgmr.msra.gmra.mrb[12].mxu1 %vm1040_vm3, %v1094_v36  ;;  %v2474_v33 = vpack.c.bf16 %v1532_v31, %v1528_v30  ;;  %v1531_v36 = vld [vmem:[#allocation8 + $0x20] sm:$0xff]  ;;  %v1565_v30 = vld [vmem:[#allocation8 + $0x130] sm:$0xff]  ;;  %v1568_v31 = vld [vmem:[#allocation8 + $0x148] sm:$0xff] }
 0x543   : > { %2350 = vmatpush3.msra.mxu1 %v724_v40  ;;  %2351 = vmatprep.mubr.msk.f32.mxu1 %vm2969_vm0, %v2968_v57  ;;  %v2476_v38 = vpack.c.bf16 %v1531_v36, %v1527_v35  ;;  %v1533_v40 = vld [vmem:[#allocation8 + $0x30] sm:$0xff]  ;;  %v1574_v35 = vld [vmem:[#allocation8 + $0x178] sm:$0xff] }
 0x544   : > { %v1095_v27 = vmul.f32 %v2709_v13, %v1091_v39  ;;  %2354 = vmatprep.subr.mxu1 %v2968_v57  ;;  %v2469_v13 = vpack.c.bf16 %v1419_v12, %v1418_v11  ;;  %v1529_v39 = vld [vmem:[#allocation8 + $0x10] sm:$0xff]  ;;  %v1558_v11 = vld [vmem:[#allocation8 + $0xf8] sm:$0xff]  ;;  %v1551_v12 = vld [vmem:[#allocation8 + $0xc0] sm:$0xff] }
 0x545   : > { %v2518_v14 = vpack.c.bf16 %v1558_v11, %v1554_v9 }
 0x546   : > { %2352 = vmatmul.mubr.msk.f32.vlgmr.msra.gmra.mrb[14].mxu1 %vm1040_vm3, %v1095_v27  ;;  %2470 = vmatpush3.bf16.msra.mxu0 %v2469_v13  ;;  %v1536_v27 = vld [vmem:[#allocation8 + $0x48] sm:$0xff]  ;;  %v1555_v13 = vld [vmem:[#allocation8 + $0xe0] sm:$0xff] }
 0x547   : > { %2356 = vmatprep.mubr.msk.f32.mxu1 %vm2969_vm0, %v2968_v57  ;;  %2471 = vmatprep.subr.bf16.mxu0 %v2967_v5  ;;  %v2152_v5 = vld [vmem:[%s3459_s5] ss:$0 sm:$0xff]  ;;  %v2488_v15 = vpack.c.bf16 %v1555_v13, %v1551_v12 }
 0x548   : > { %v2154_v12 = vld [vmem:[%s3491_s30] ss:$0 sm:$0xff]  ;;  %s3494_s30 = sld [smem:[#allocation20_spill]] }
 0x54a   : > { %2473 = vmatpush3.bf16.msra.mxu0 %v2472_v16  ;;  %v1553_v16 = vld [vmem:[#allocation8 + $0xd0] sm:$0xff] }
 0x54e   : > { %s3410_s7 = scalar_lea.hbm %s3494_s30, %s2161_s14 }
 0x563   : > { %v1076_v41 = vpop.xlane.xlu1 %1075 }
 0x564   : > { %2718 = vrcp.f32 %v1076_v41 }
 0x567   : > { %v727_v42 = vpop.permute.xlu1 %726 }
 0x568   : > { %2355 = vmatpush3.msra.mxu1 %v727_v42  ;;  %v1540_v42 = vld [vmem:[#allocation8 + $0x68] sm:$0xff] }
 0x569   : > { %2475 = vmatprep.subr.bf16.mxu1 %v2474_v33  ;;  %v1572_v33 = vld [vmem:[#allocation8 + $0x168] sm:$0xff] }
 0x56a   : > { %v2494_v36 = vpack.c.bf16 %v1572_v33, %v1568_v31  ;;  %v1838_v31 = vld [vmem:[#allocation10 + $0x198] sm:$0xff] }
 0x56b   : > { %v1790_v33 = vld [vmem:[#allocation10 + $0x18] sm:$0xff] }
 0x56e   : > { %v2719_v43 = vpop.eup %2718 }
 0x56f   : > { %v1084_v44 = vmul.f32 %v2719_v43, %v1076_v41  ;;  %v2508_v41 = vpack.c.bf16 %v1533_v40, %v1529_v39  ;;  %v1571_v39 = vld [vmem:[#allocation8 + $0x160] sm:$0xff]  ;;  %v1569_v40 = vld [vmem:[#allocation8 + $0x150] sm:$0xff] }
 0x571   : > { %v1088_v45 = vsub.f32 2.0, %v1084_v44  ;;  %v2478_v44 = vpack.c.bf16 %v1540_v42, %v1536_v27  ;;  %v1576_v42 = vld [vmem:[#allocation8 + $0x188] sm:$0xff] }
 0x573   : > { %v1092_v46 = vmul.f32 %v2719_v43, %v1088_v45  ;;  %v1538_v43 = vld [vmem:[#allocation8 + $0x58] sm:$0xff] }
 0x575   : > { %v1096_v47 = vmul.f32 %v2713_v24, %v1092_v46  ;;  %v1535_v46 = vld [vmem:[#allocation8 + $0x40] sm:$0xff] }
 0x577   : > { %2357 = vmatmul.mubr.msk.f32.vlgmr.msra.gmra.mrb[16].mxu1 %vm1040_vm3, %v1096_v47  ;;  %v1539_v47 = vld [vmem:[#allocation8 + $0x60] sm:$0xff] }
 0x578   : > { %1677 = vmatprep.mubr.f32.mxu1 %v2968_v57  ;;  %2477 = vmatpush1.bf16.msra.mxu1 %v2476_v38  ;;  %v1567_v38 = vld [vmem:[#allocation8 + $0x140] sm:$0xff] }
 0x579   : > { %2479 = vmatprep.subr.bf16.mxu1 %v2478_v44  ;;  %v2496_v27 = vpack.c.bf16 %v1571_v39, %v1567_v38  ;;  %v1807_v39 = vld [vmem:[#allocation10 + $0xa0] sm:$0xff] }
 0x59f   : > { %v1166_v48 = vpop.f32.mrb[10].mxu1 }
 0x5a0   : > { %v2343_v49 = vpop.f32.mrb[11].mxu1 }
 0x5a1   : > { %v2480_v49 = vpack.c.bf16 %v1539_v47, %v1535_v46  ;;  %v1582_v46 = vld [vmem:[#allocation8 + $0x1b8] sm:$0xff]  ;;  %v1575_v47 = vld [vmem:[#allocation8 + $0x180] sm:$0xff] }
 0x5a3   : > { %2481 = vmatpush1.bf16.msra.mxu1 %v2480_v49  ;;  %v1579_v49 = vld [vmem:[#allocation8 + $0x1a0] sm:$0xff] }
 0x5a4   : > { %2483 = vmatprep.subr.bf16.mxu1 %v2482_v54  ;;  %v2500_v52 = vpack.c.bf16 %v1579_v49, %v1575_v47  ;;  %v1588_v54 = vld [vmem:[#allocation8 + $0x1e8] sm:$0xff]  ;;  %v1809_v49 = vld [vmem:[#allocation10 + $0xb0] sm:$0xff] }
 0x5a5   : > { %v1824_v47 = vld [vmem:[#allocation10 + $0x128] sm:$0xff] }
 0x615   : > { %v1239_v60 = vpop.f32.mrb[12].mxu1 }
 0x616   : > { %1390 = vrot.lane.b32.xlu0 %v1239_v60, %s2972_s9  ;;  %v2348_v63 = vpop.f32.mrb[13].mxu1  ;;  %v1547_v60 = vld [vmem:[#allocation8 + $0xa0] sm:$0xff] }
 0x617   : > { %v2484_v63 = vpack.c.bf16 %v1547_v60, %v1543_v58  ;;  %v1583_v60 = vld [vmem:[#allocation8 + $0x1c0] sm:$0xff] }
 0x619   : > { %v1312_v2 = vpop.f32.mrb[14].mxu1  ;;  %2485 = vmatpush1.bf16.msra.mxu1 %v2484_v63  ;;  %v1585_v63 = vld [vmem:[#allocation8 + $0x1d0] sm:$0xff] }
 0x61a   : > { %1394 = vrot.lane.b32.xlu1 %v1312_v2, %s2971_s18  ;;  %v2353_v6 = vpop.f32.mrb[15].mxu1  ;;  %2487 = vmatprep.subr.bf16.mxu1 %v2486_v10  ;;  %v2153_v10 = vld [vmem:[%s3460_s6] ss:$0 sm:$0xff]  ;;  %s2886_s18 = scalar_lea.vmem %s2885_s26, 256 }
 0x61d   : > { %2489 = vmatpush1.bf16.msra.mxu1 %v2488_v15  ;;  %v1803_v15 = vld [vmem:[#allocation10 + $0x80] sm:$0xff] }
 0x64a   : > { %v1385_v17 = vpop.f32.mrb[16].mxu1 }
 0x64b   : > { %1398 = vrot.lane.b32.xlu0 %v1385_v17, %s2970_s12  ;;  %v2358_v18 = vpop.f32.mrb[17].mxu1  ;;  %v1557_v17 = vld [vmem:[#allocation8 + $0xf0] sm:$0xff]  ;;  %s3492_s12 = sld [smem:[#allocation18_spill]] }
 0x64c   : > { %v2520_v18 = vpack.c.bf16 %v1557_v17, %v1553_v16  ;;  %v1804_v16 = vld [vmem:[#allocation10 + $0x88] sm:$0xff]  ;;  %v1835_v17 = vld [vmem:[#allocation10 + $0x180] sm:$0xff] }
 0x688   : > { %v1391_v19 = vpop.permute.xlu0 %1390 }
 0x689   : > { %v1401_v21 = vsel %vm729_vm1, %v1166_v48, %v1391_v19  ;;  %v1537_v48 = vld [vmem:[#allocation8 + $0x50] sm:$0xff]  ;;  %v1560_v19 = vld [vmem:[#allocation8 + $0x108] sm:$0xff] }
 0x68a   : > { %v2512_v53 = vpack.c.bf16 %v1541_v50, %v1537_v48  ;;  %v1577_v50 = vld [vmem:[#allocation8 + $0x190] sm:$0xff] }
 0x68b   : > { %v2532_v56 = vpack.c.bf16 %v1581_v51, %v1577_v50  ;;  %v1810_v50 = vld [vmem:[#allocation10 + $0xb8] sm:$0xff]  ;;  %v1841_v51 = vld [vmem:[#allocation10 + $0x1b0] sm:$0xff] }
 0x68c   : > { %v1395_v20 = vpop.permute.xlu1 %1394 }
 0x68d   : > { %v1403_v22 = vsel %vm1402_vm4, %v1401_v21, %v1395_v20  ;;  %v1564_v20 = vld [vmem:[#allocation8 + $0x128] sm:$0xff]  ;;  %v1562_v21 = vld [vmem:[#allocation8 + $0x118] sm:$0xff] }
 0x6bd   : > { %v1399_v23 = vpop.permute.xlu0 %1398 }
 0x6be   : > { %v1405_v24 = vsel %vm1404_vm5, %v1403_v22, %v1399_v23  ;;  %v2490_v22 = vpack.c.bf16 %v1564_v20, %v1560_v19  ;;  %v1566_v23 = vld [vmem:[#allocation8 + $0x138] sm:$0xff]  ;;  %v1836_v19 = vld [vmem:[#allocation10 + $0x188] sm:$0xff]  ;;  %v1787_v20 = vld [vmem:[#allocation10] sm:$0xff] }
 0x6bf   : > { %2392 = vmatmul.mubr.f32.vlgmr.msra.gmra.mrb[2].mxu0 %v1405_v24  ;;  %v1559_v24 = vld [vmem:[#allocation8 + $0x100] sm:$0xff] }
 0x6c0   : > { %1748 = vmatprep.mubr.f32.mxu0 %v2968_v57  ;;  %v2506_v57 = vpack.c.bf16 %v1534_v34, %v1530_v32  ;;  %2491 = vmatprep.subr.bf16.mxu1 %v2490_v22  ;;  %v1570_v34 = vld [vmem:[#allocation8 + $0x158] sm:$0xff]  ;;  %v2570_v22 = vpack.c.bf16 %v1836_v19, %v1835_v17 }
 0x6c1   : > { %v1846_v17 = vld [vmem:[#allocation10 + $0x1d8] sm:$0xff] }
 0x6c2   : > { %2507 = vmatprep.subr.bf16.mxu0 %v2506_v57  ;;  %v2526_v57 = vpack.c.bf16 %v1574_v35, %v1570_v34  ;;  %v1798_v19 = vld [vmem:[#allocation10 + $0x58] sm:$0xff] }
 0x6c3   : > { %2509 = vmatpush1.bf16.msra.mxu0 %v2508_v41  ;;  %v1573_v41 = vld [vmem:[#allocation8 + $0x170] sm:$0xff] }
 0x792   : > { %v1495_v25 = vpop.f32.mrb[2].mxu0 }
 0x793   : > { %v1496_v26 = vadd.f32 %v2152_v5, %v1495_v25  ;;  %v2393_v28 = vpop.f32.mrb[3].mxu0  ;;  %v1563_v5 = vld [vmem:[#allocation8 + $0x120] sm:$0xff]  ;;  %v2522_v25 = vpack.c.bf16 %v1566_v23, %v1562_v21  ;;  %v1788_v21 = vld [vmem:[#allocation10 + $0x8] sm:$0xff] }
 0x794   : > { %v1561_v28 = vld [vmem:[#allocation8 + $0x110] sm:$0xff]  ;;  %v2540_v23 = vpack.c.bf16 %v1788_v21, %v1787_v20 }
 0x795   : > { %v3378_v29 = vadd.f32 %v1496_v26, %v3270_v0  ;;  %v1542_v0 = vld [vmem:[#allocation8 + $0x78] sm:$0xff]  ;;  %v2492_v26 = vpack.c.bf16 %v1563_v5, %v1559_v24  ;;  %v2524_v32 = vpack.c.bf16 %v1565_v30, %v1561_v28  ;;  %v1819_v24 = vld [vmem:[#allocation10 + $0x100] sm:$0xff]  ;;  %v1820_v5 = vld [vmem:[#allocation10 + $0x108] sm:$0xff] }
 0x796   : > { %v2510_v45 = vpack.c.bf16 %v1542_v0, %v1538_v43  ;;  %v1580_v43 = vld [vmem:[#allocation8 + $0x1a8] sm:$0xff]  ;;  %v2528_v0 = vpack.c.bf16 %v1573_v41, %v1569_v40  ;;  %v1837_v28 = vld [vmem:[#allocation10 + $0x190] sm:$0xff] }
 0x797   : > { %1500 = vadd.xlane.f32.xlu1 %v3378_v29  ;;  %2493 = vmatpush1.bf16.msra.mxu1 %v2492_v26  ;;  %v2498_v44 = vpack.c.bf16 %v1580_v43, %v1576_v42  ;;  %v1806_v26 = vld [vmem:[#allocation10 + $0x98] sm:$0xff]  ;;  %v2574_v34 = vpack.c.bf16 %v1838_v31, %v1837_v28  ;;  %v1808_v40 = vld [vmem:[#allocation10 + $0xa8] sm:$0xff]  ;;  %v1791_v43 = vld [vmem:[#allocation10 + $0x20] sm:$0xff] }
 0x798   : > { %2511 = vmatprep.subr.bf16.mxu0 %v2510_v45  ;;  %2495 = vmatprep.subr.bf16.mxu1 %v2494_v36  ;;  %v1578_v45 = vld [vmem:[#allocation8 + $0x198] sm:$0xff]  ;;  %v1821_v36 = vld [vmem:[#allocation10 + $0x110] sm:$0xff]  ;;  %v2546_v41 = vpack.c.bf16 %v1808_v40, %v1807_v39  ;;  %v1840_v42 = vld [vmem:[#allocation10 + $0x1a8] sm:$0xff] }
 0x799   : > { %2513 = vmatpush1.bf16.msra.mxu0 %v2512_v53  ;;  %v2530_v48 = vpack.c.bf16 %v1582_v46, %v1578_v45  ;;  %v1584_v53 = vld [vmem:[#allocation8 + $0x1c8] sm:$0xff]  ;;  %v1823_v46 = vld [vmem:[#allocation10 + $0x120] sm:$0xff]  ;;  %v1849_v39 = vld [vmem:[#allocation10 + $0x1f0] sm:$0xff] }
 0x79a   : > { %2515 = vmatprep.subr.bf16.mxu0 %v2514_v59  ;;  %v2502_v58 = vpack.c.bf16 %v1588_v54, %v1584_v53  ;;  %v1590_v59 = vld [vmem:[#allocation8 + $0x1f8] sm:$0xff]  ;;  %v1793_v54 = vld [vmem:[#allocation10 + $0x30] sm:$0xff]  ;;  %v1848_v28 = vld [vmem:[#allocation10 + $0x1e8] sm:$0xff] }
 0x79b   : > { %2497 = vmatpush1.bf16.msra.mxu1 %v2496_v27  ;;  %v2534_v62 = vpack.c.bf16 %v1590_v59, %v1586_v55  ;;  %v1839_v27 = vld [vmem:[#allocation10 + $0x1a0] sm:$0xff]  ;;  %v1842_v53 = vld [vmem:[#allocation10 + $0x1b8] sm:$0xff]  ;;  %v1825_v59 = vld [vmem:[#allocation10 + $0x130] sm:$0xff] }
 0x79c   : > { %2499 = vmatprep.subr.bf16.mxu1 %v2498_v44  ;;  %v2578_v44 = vpack.c.bf16 %v1840_v42, %v1839_v27  ;;  %v1794_v55 = vld [vmem:[#allocation10 + $0x38] sm:$0xff]  ;;  %v1800_v31 = vld [vmem:[#allocation10 + $0x68] sm:$0xff] }
 0x79d   : > { %2517 = vmatpush1.bf16.msra.mxu0 %v2516_v1  ;;  %v1589_v1 = vld [vmem:[#allocation8 + $0x1f0] sm:$0xff]  ;;  %v1850_v27 = vld [vmem:[#allocation10 + $0x1f8] sm:$0xff] }
 0x79e   : > { %2519 = vmatprep.subr.bf16.mxu0 %v2518_v14  ;;  %v1802_v42 = vld [vmem:[#allocation10 + $0x78] sm:$0xff] }
 0x79f   : > { %2501 = vmatpush1.bf16.msra.mxu1 %v2500_v52  ;;  %v2550_v52 = vpack.c.bf16 %v1810_v50, %v1809_v49  ;;  %v1591_v49 = vld [vmem:[%s3492_s12] sm:$0xf]  ;;  %v1599_v50 = vsub.s32 1, %v3332_v37  ;;  %s2880_s12 = scalar_lea.vmem %s3412_s20, 128 }
 0x7a0   : > { %2503 = vmatprep.subr.bf16.mxu1 %v2502_v58  ;;  %v2552_v58 = vpack.c.bf16 %v1794_v55, %v1793_v54  ;;  %p2881_p6 = scmp.ne.s32.totalorder %s3412_s20, %s2880_s12  ;;  %p2888_p1 = scmp.lt.s32.totalorder %s2886_s18, %s2880_s12 }
 0x7a1   : > { %2521 = vmatpush1.bf16.msra.mxu0 %v2520_v18  ;;  %v2538_v18 = vpack.c.bf16 %v1804_v16, %v1803_v15  ;;  %v1845_v15 = vld [vmem:[#allocation10 + $0x1d0] sm:$0xff]  ;;  %v1600_v54 = vrot.slane %v1591_v49, %v1599_v50 }
 0x7a2   : > { %2523 = vmatprep.subr.bf16.mxu0 %v2522_v25  ;;  %v1805_v25 = vld [vmem:[#allocation10 + $0x90] sm:$0xff]  ;;  %v2590_v20 = vpack.c.bf16 %v1846_v17, %v1845_v15  ;;  %p2882_p2 = pnand %p2881_p6, %p3495_p0  ;;  %p2889_p11 = por %p2888_p1, %p2887_p10 }
 0x7a3   : > { %v2542_v30 = vpack.c.bf16 %v1806_v26, %v1805_v25  ;;  %v1847_v25 = vld [vmem:[#allocation10 + $0x1e0] sm:$0xff] }
 0x7a4   : > { %p2883_p5 = pneg %p2882_p2 }
 0x7a5   : > { %2525 = vmatpush1.bf16.msra.mxu0 %v2524_v32  ;;  %v1789_v32 = vld [vmem:[#allocation10 + $0x10] sm:$0xff] }
 0x7a6   : > { %2527 = vmatprep.subr.bf16.mxu0 %v2526_v57  ;;  %v2544_v35 = vpack.c.bf16 %v1790_v33, %v1789_v32  ;;  %v1822_v57 = vld [vmem:[#allocation10 + $0x118] sm:$0xff]  ;;  %v2594_v32 = vpack.c.bf16 %v1848_v28, %v1847_v25  ;;  %v2159_v28 = vld [vmem:[%s3493_s11] ss:$0 sm:$0xff]  ;;  %p2890_p12 = pnand %p2889_p11, %p2883_p5 }
 0x7a7   : > { %v2576_v38 = vpack.c.bf16 %v1822_v57, %v1821_v36  ;;  %v1817_v57 = vld [vmem:[#allocation10 + $0xf0] sm:$0xff] }
 0x7a9   : > { %2529 = vmatpush1.bf16.msra.mxu0 %v2528_v0  ;;  %v1792_v0 = vld [vmem:[#allocation10 + $0x28] sm:$0xff] }
 0x7aa   : > { %2531 = vmatprep.subr.bf16.mxu0 %v2530_v48  ;;  %v2548_v45 = vpack.c.bf16 %v1792_v0, %v1791_v43  ;;  %v2580_v48 = vpack.c.bf16 %v1824_v47, %v1823_v46  ;;  %v2598_v43 = vpack.c.bf16 %v1850_v27, %v1849_v39  ;;  %v1595_v47 = vsub.s32 0, %v3332_v37 }
 0x7ad   : > { %2533 = vmatpush1.bf16.msra.mxu0 %v2532_v56  ;;  %v2582_v56 = vpack.c.bf16 %v1842_v53, %v1841_v51  ;;  %v1607_v51 = vsub.s32 3, %v3332_v37 }
 0x7ae   : > { %2535 = vmatprep.subr.bf16.mxu0 %v2534_v62  ;;  %v1811_v62 = vld [vmem:[#allocation10 + $0xc0] sm:$0xff] }
 0x7af   : > { %v1608_v55 = vrot.slane %v1591_v49, %v1607_v51 }
 0x824   : > { %v1501_v2 = vpop.xlane.xlu1 %1500 }
 0x825   : > { %v1502_v3 = vmul.f32 0.0078125, %v1501_v2  ;;  %v2504_v2 = vpack.c.bf16 %v1587_v61, %v1583_v60  ;;  %v1826_v60 = vld [vmem:[#allocation10 + $0x138] sm:$0xff] }
 0x826   : > { %v2584_v61 = vpack.c.bf16 %v1826_v60, %v1825_v59 }
 0x827   : > { %v3382_v4 = vsub.f32 %v3378_v29, %v1502_v3  ;;  %v2536_v3 = vpack.c.bf16 %v1589_v1, %v1585_v63  ;;  %2505 = vmatpush1.bf16.msra.mxu1 %v2504_v2  ;;  %v1812_v63 = vld [vmem:[#allocation10 + $0xc8] sm:$0xff]  ;;  %v1843_v1 = vld [vmem:[#allocation10 + $0x1c0] sm:$0xff] }
 0x828   : > { %2539 = vmatprep.subr.bf16.mxu1 %v2538_v18  ;;  %v2554_v2 = vpack.c.bf16 %v1812_v63, %v1811_v62  ;;  %v1797_v18 = vld [vmem:[#allocation10 + $0x50] sm:$0xff] }
 0x829   : > { %v1504_v6 = vmul.f32 %v3382_v4, %v3382_v4  ;;  %2537 = vmatpush1.bf16.msra.mxu0 %v2536_v3  ;;  %v1844_v3 = vld [vmem:[#allocation10 + $0x1c8] sm:$0xff]  ;;  %v2560_v21 = vpack.c.bf16 %v1798_v19, %v1797_v18 }
 0x82a   : > { %2571 = vmatprep.subr.bf16.mxu0 %v2570_v22  ;;  %v1829_v22 = vld [vmem:[#allocation10 + $0x150] sm:$0xff] }
 0x82b   : > { %1505 = vadd.xlane.f32.xlu0 %v1504_v6 }
 0x8b8   : > { %v1506_v6 = vpop.xlane.xlu0 %1505 }
 0x8b9   : > { %v1507_v7 = vmul.f32 0.0078125, %v1506_v6  ;;  %v1795_v6 = vld [vmem:[#allocation10 + $0x40] sm:$0xff] }
 0x8bb   : > { %v1508_v8 = vadd.f32 1e-05, %v1507_v7  ;;  %v1796_v7 = vld [vmem:[#allocation10 + $0x48] sm:$0xff] }
 0x8bd   : > { %2720 = vrsqrt.f32 %v1508_v8  ;;  %v2586_v8 = vpack.c.bf16 %v1844_v3, %v1843_v1 }
 0x8c7   : > { %v2721_v9 = vpop.eup %2720 }
 0x8c8   : > { %v1510_v11 = vmul.f32 %v2721_v9, %v3382_v4  ;;  %v2572_v4 = vpack.c.bf16 %v1820_v5, %v1819_v24  ;;  %v2556_v9 = vpack.c.bf16 %v1796_v7, %v1795_v6  ;;  %v1815_v5 = vld [vmem:[#allocation10 + $0xe0] sm:$0xff] }
 0x8ca   : > { %v1518_v13 = vmul.f32 %v2153_v10, %v1510_v11  ;;  %v1827_v10 = vld [vmem:[#allocation10 + $0x140] sm:$0xff]  ;;  %v1828_v11 = vld [vmem:[#allocation10 + $0x148] sm:$0xff] }
 0x8cc   : > { %v1526_v14 = vadd.f32 %v2154_v12, %v1518_v13  ;;  %v2588_v12 = vpack.c.bf16 %v1828_v11, %v1827_v10  ;;  %v1813_v13 = vld [vmem:[#allocation10 + $0xd0] sm:$0xff] }
 0x8ce   : > { %1678 = vmatmul.mubr.f32.vlgmr.msra.gmra.mrb[18].mxu1 %v1526_v14  ;;  %1749 = vmatmul.mubr.f32.vlgmr.msra.gmra.mrb[4].mxu0 %v1526_v14  ;;  %v1814_v14 = vld [vmem:[#allocation10 + $0xd8] sm:$0xff] }
 0x8cf   : > { %2541 = vmatpush3.bf16.msra.mxu1 %v2540_v23  ;;  %2573 = vmatpush3.bf16.msra.mxu0 %v2572_v4  ;;  %v2558_v16 = vpack.c.bf16 %v1814_v14, %v1813_v13  ;;  %v1830_v23 = vld [vmem:[#allocation10 + $0x158] sm:$0xff]  ;;  %v1816_v4 = vld [vmem:[#allocation10 + $0xe8] sm:$0xff] }
 0x8d0   : > { %2543 = vmatprep.subr.bf16.mxu1 %v2542_v30  ;;  %2575 = vmatprep.subr.bf16.mxu0 %v2574_v34  ;;  %v2592_v24 = vpack.c.bf16 %v1830_v23, %v1829_v22  ;;  %v2562_v26 = vpack.c.bf16 %v1816_v4, %v1815_v5  ;;  %v1799_v30 = vld [vmem:[#allocation10 + $0x60] sm:$0xff] }
 0x8d1   : > { %v2564_v33 = vpack.c.bf16 %v1800_v31, %v1799_v30  ;;  %v1831_v34 = vld [vmem:[#allocation10 + $0x160] sm:$0xff] }
 0x8d3   : > { %2545 = vmatpush3.bf16.msra.mxu1 %v2544_v35  ;;  %2577 = vmatpush3.bf16.msra.mxu0 %v2576_v38  ;;  %v1832_v35 = vld [vmem:[#allocation10 + $0x168] sm:$0xff]  ;;  %v1818_v38 = vld [vmem:[#allocation10 + $0xf8] sm:$0xff] }
 0x8d4   : > { %2547 = vmatprep.subr.bf16.mxu1 %v2546_v41  ;;  %2579 = vmatprep.subr.bf16.mxu0 %v2578_v44  ;;  %v2596_v36 = vpack.c.bf16 %v1832_v35, %v1831_v34  ;;  %v2566_v40 = vpack.c.bf16 %v1818_v38, %v1817_v57  ;;  %v1801_v41 = vld [vmem:[#allocation10 + $0x70] sm:$0xff] }
 0x8d5   : > { %v2568_v0 = vpack.c.bf16 %v1802_v42, %v1801_v41  ;;  %v1833_v44 = vld [vmem:[#allocation10 + $0x170] sm:$0xff] }
 0x8d7   : > { %2549 = vmatpush3.bf16.msra.mxu1 %v2548_v45  ;;  %2581 = vmatpush3.bf16.msra.mxu0 %v2580_v48  ;;  %v1834_v45 = vld [vmem:[#allocation10 + $0x178] sm:$0xff]  ;;  %v1603_v48 = vsub.s32 2, %v3332_v37 }
 0x8d8   : > { %2551 = vmatprep.subr.bf16.mxu1 %v2550_v52  ;;  %2583 = vmatprep.subr.bf16.mxu0 %v2582_v56  ;;  %v2600_v46 = vpack.c.bf16 %v1834_v45, %v1833_v44  ;;  %v1596_v52 = vrot.slane %v1591_v49, %v1595_v47 }
 0x8d9   : > { %v1604_v53 = vrot.slane %v1591_v49, %v1603_v48 }
 0x8db   : > { %2553 = vmatpush3.bf16.msra.mxu1 %v2552_v58  ;;  %2585 = vmatpush3.bf16.msra.mxu0 %v2584_v61 }
 0x8dc   : > { %2555 = vmatprep.subr.bf16.mxu1 %v2554_v2  ;;  %2587 = vmatprep.subr.bf16.mxu0 %v2586_v8 }
 0x8df   : > { %2557 = vmatpush3.bf16.msra.mxu1 %v2556_v9  ;;  %2589 = vmatpush3.bf16.msra.mxu0 %v2588_v12 }
 0x8e0   : > { %2559 = vmatprep.subr.bf16.mxu1 %v2558_v16  ;;  %2591 = vmatprep.subr.bf16.mxu0 %v2590_v20 }
 0x8e3   : > { %2561 = vmatpush3.bf16.msra.mxu1 %v2560_v21  ;;  %2593 = vmatpush3.bf16.msra.mxu0 %v2592_v24 }
 0x8e4   : > { %2563 = vmatprep.subr.bf16.mxu1 %v2562_v26  ;;  %2595 = vmatprep.subr.bf16.mxu0 %v2594_v32 }
 0x8e7   : > { %2565 = vmatpush3.bf16.msra.mxu1 %v2564_v33  ;;  %2597 = vmatpush3.bf16.msra.mxu0 %v2596_v36 }
 0x8e8   : > { %2567 = vmatprep.subr.bf16.mxu1 %v2566_v40  ;;  %2599 = vmatprep.subr.bf16.mxu0 %v2598_v43 }
 0x8eb   : > { %2569 = vmatpush3.bf16.msra.mxu1 %v2568_v0  ;;  %2601 = vmatpush3.bf16.msra.mxu0 %v2600_v46 }
 0x9a1   : > { %v1679_v56 = vpop.f32.mrb[18].mxu1  ;;  %v1750_v58 = vpop.f32.mrb[4].mxu0 }
 0x9a2   : > { %v1680_v59 = vadd.f32 %v1679_v56, %v1596_v52  ;;  %v1751_v60 = vadd.f32 %v1750_v58, %v1604_v53  ;;  %v1681_v61 = vpop.f32.mrb[19].mxu1  ;;  %v1752_v62 = vpop.f32.mrb[5].mxu0 }
 0x9a3   : > { %v1682_v63 = vadd.f32 %v1681_v61, %v1600_v54  ;;  %v1753_v1 = vadd.f32 %v1752_v62, %v1608_v55 }
 0x9a4   : > { %v2155_v2 = vmul.f32 -1.702, %v1680_v59  ;;  %v2157_v3 = vmul.f32 -1.702, %v1751_v60 }
 0x9a5   : > { %v2156_v6 = vmul.f32 -1.702, %v1682_v63  ;;  %v2158_v7 = vmul.f32 -1.702, %v1753_v1 }
 0x9a6   : > { %v1763_v8 = vmul.f32 1.442695, %v2155_v2  ;;  %v1767_v9 = vmul.f32 1.442695, %v2157_v3 }
 0x9a7   : > { %v1765_v10 = vmul.f32 1.442695, %v2156_v6  ;;  %v1769_v37 = vmul.f32 1.442695, %v2158_v7 }
 0x9a8   : > { %2722 = vpow2.f32 %v1763_v8 }
 0x9a9   : > { %2724 = vpow2.f32 %v1767_v9 }
 0x9aa   : > { %2726 = vpow2.f32 %v1765_v10 }
 0x9ab   : > { %2728 = vpow2.f32 %v1769_v37 }
 0x9b2   : > { %v2723_v11 = vpop.eup %2722 }
 0x9b3   : > { %v2725_v12 = vpop.eup %2724  ;;  %v1771_v13 = vadd.f32 1.0, %v2723_v11 }
 0x9b4   : > { %v2727_v14 = vpop.eup %2726  ;;  %v1773_v15 = vadd.f32 1.0, %v2725_v12 }
 0x9b5   : > { %v2729_v16 = vpop.eup %2728  ;;  %2730 = vrcp.f32 %v1771_v13  ;;  %v1772_v17 = vadd.f32 1.0, %v2727_v14 }
 0x9b6   : > { %2732 = vrcp.f32 %v1773_v15  ;;  %v1774_v18 = vadd.f32 1.0, %v2729_v16 }
 0x9b7   : > { %2734 = vrcp.f32 %v1772_v17 }
 0x9b8   : > { %2736 = vrcp.f32 %v1774_v18 }
 0x9bf   : > { %v2731_v19 = vpop.eup %2730 }
 0x9c0   : > { %v2733_v20 = vpop.eup %2732  ;;  %v1783_v24 = vmul.f32 %v2731_v19, %v1680_v59 }
 0x9c1   : > { %v2735_v21 = vpop.eup %2734  ;;  %v1785_v4 = vmul.f32 %v2733_v20, %v1751_v60 }
 0x9c2   : > { %v2737_v22 = vpop.eup %2736  ;;  %v1784_v23 = vmul.f32 %v2735_v21, %v1682_v63 }
 0x9c3   : > { %v1786_v5 = vmul.f32 %v2737_v22, %v1753_v1 }
 0x9c4   : > { %1922 = vmatprep.mubr.f32.mxu1 %v1784_v23 }
 0x9c5   : > { %1992 = vmatprep.mubr.f32.mxu0 %v1786_v5  ;;  %1923 = vmatmul.mubr.f32.vlgmr.msra.gmra.mrb[20].mxu1 %v1783_v24 }
 0x9c6   : > { %1993 = vmatmul.mubr.f32.vlgmr.msra.gmra.mrb[6].mxu0 %v1785_v4 }
 0xa98   : > { %v2246_v25 = vpop.f32.mrb[20].mxu1 }
 0xa99   : > { %v2281_v26 = vpop.f32.mrb[6].mxu0  ;;  %v2247_v30 = vpop.f32.mrb[21].mxu1 }
 0xa9a   : > { %v2248_v31 = vadd.f32 %v2247_v30, %v2246_v25  ;;  %v2282_v32 = vpop.f32.mrb[7].mxu0 }
 0xa9b   : > { %v2283_v33 = vadd.f32 %v2282_v32, %v2281_v26 }
 0xa9c   : > { %v1925_v34 = vadd.f32 %v2248_v31, %v2159_v28 }
 0xa9e   : > { %v1995_v35 = vadd.f32 %v2283_v33, %v1925_v34 }
 0xaa0   : > { %v1998_v36 = vadd.f32 %v1995_v35, %v3378_v29 }
 0xaa2   : > { %1999 = vst [vmem:[%s486_s16] sm:$0xff] %v1998_v36 }
 0xaa3   : > { %2893 = shalt.err (!%p2890_p12)
}
 0xaa4   : > { %s2894_s3 = scalar_lea.hbm %s3410_s7, 128  ;;  %s2898_s14 = scalar_lea.hbm %s3494_s30, 256 }
 0xaa5   : > { %p2895_p13 = scmp.ne.s32.totalorder %s3410_s7, %s2894_s3  ;;  %p2899_p9 = scmp.lt.u32.totalorder %s3410_s7, %s3494_s30 }
 0xaa6   : > { %p2900_p4 = scmp.lt.u32.totalorder %s2898_s14, %s2894_s3  ;;  %p2902_p6 = scmp.lt.u32.totalorder %s2894_s3, %s3410_s7 }
 0xaa7   : > { %p2896_p3 = pnand %p2895_p13, %p3495_p0 }
 0xaa8   : > { %p2901_p8 = por %p2900_p4, %p2899_p9 }
 0xaa9   : > { %p2897_p7 = pneg %p2896_p3 }
 0xaaa   : > { %p2903_p2 = por %p2902_p6, %p2901_p8 }
 0xaac   : > { %p2904_p5 = pnand %p2903_p2, %p2897_p7 }
 0xaae   : > { %2907 = shalt.err (!%p2904_p5)
}
 0xaaf   : > { %2620 = dma.vmem_to_hbm [thread:$0]  (%p3495_p0), %s3412_s20, 128, %s3410_s7, %s2001_s25  }
 0xab0 PF: > { %s2026_s28 = sand.u32 1, %s2942_s21   ;;  %p3496_p10 = scmp.ne.s32.totalorder %s3484_s29, 0 }
 0xab1   : > { %p3497_p1 = scmp.ge.s32.totalorder %s2954_s24, 2  ;;  %s2027_s12 = scalar_lea.sflag [#allocation4], %s2026_s28 }
 0xab3   : > { %p2640_p11 = pnand %p3497_p1, %p3496_p10 }
 0xab5   : > { %2937 = dma.done.wait (!%p2640_p11), %s2027_s12, 128  }
 0xab6   : > { %2939 = vsyncadd (!%p2640_p11), %s2027_s12, 4294967168  ;;  %p27_p12 = scmp.ge.s32.totalorder %s3176_s13, 4   ;;  %s3498_s21 = smov %s2946_s22 }
 0xab7   : > { %s3499_s22 = smov %s2950_s23  ;;  %s3500_s23 = smov %s3187_s19 }
 0xab8   : > { %s3501_s24 = smov %s3176_s13  ;;  %29 = sbr.rel (!%p27_p12) target bundleno = 13 (0xd), region = 129 }
 0xabf   :  { %2032 = vsyncpa [#allocation3], 1 }
 0xac0   :  { %2034 = vsyncpa [#allocation3 + $0x1], 1 }
 0xac1   :  { %2035 = vsyncpa [#allocation6], 1 }
 0xac2   :  { %2036 = vsyncpa [#allocation9], 1 }
 0xac3   :  { %2037 = vsyncpa [#allocation4], 1 }
 0xac4   :  { %2039 = vsyncpa [#allocation4 + $0x1], 1 }

</bundles_post_ra>
